<compile_context>
chip_gen: v6e
topology: v6e:2x2x1
jax: 0.10.0
libtpu: 0.0.40
codegen_flags: <defaults>
</compile_context>

<pallas_src>
import math
import jax
import jax.numpy as jnp
from jax.experimental import pallas as pl
from jax.experimental.pallas import tpu as pltpu

# ---------------- module hyper-parameters (consistent with __init__) ---------
L = 4                       # positional-encoding frequencies
T = 0                       # no neural texture
COND = (L * 2 + 1) * 2 + T  # 18
DIN = COND + 2              # 20  (cond ++ z)
C1 = 32                     # hidden width of reparameterization MLP
D1 = 1                      # number of hidden (C1->C1) layers
DOUT = 3                    # mlp output dim (before softplus / normalize)
OUT_PAD = 8                 # last-layer output rows padded to the f32 sublane tile


# ------------------------------------------------------------- device helpers
def _device_kind():
    try:
        return jax.devices()[0].device_kind.lower()
    except Exception:
        return ""


def default_act_dtype():
    """bf16 elementwise on chips with bf16 VPU/EUP (v6e/v7x); f32 on v5e."""
    kind = _device_kind()
    if ("v5e" in kind) or ("v5 lite" in kind) or ("v5lite" in kind):
        return jnp.float32
    return jnp.bfloat16


def _is_megacore():
    """v7x has 2 TensorCores sharing the 'parallel' grid axis."""
    kind = _device_kind()
    return ("v7" in kind) or ("tpu7" in kind) or kind.endswith("7x")


# ---------------------------------------------------------------- glue (JAX) -
def positional_encoding(x, num_freq=L):
    feats = [x]
    for i in range(num_freq):
        feats.append(jnp.sin((2.0 ** i) * x))
        feats.append(jnp.cos((2.0 ** i) * x))
    return jnp.concatenate(feats, axis=-1)


def encode_cond(wo, f=None):
    """wo: (B,2) viewing dir, f: (B,T) neural texture -> (B, COND)."""
    enc = positional_encoding(wo)
    if f is None or f.shape[-1] == 0:
        return enc
    return jnp.concatenate([f, enc], axis=-1)


def box_muller(sample2):
    r = jnp.sqrt(-2.0 * jnp.log(jnp.clip(sample2[..., 0], 1e-12, None)))
    theta = 2.0 * math.pi * sample2[..., 1]
    return jnp.stack([jnp.cos(theta) * r, jnp.sin(theta) * r], axis=-1)


def init_mlp_params(key, d_in, d_out, width, depth):
    """make_mlp(d_in, d_out, width, depth): Linear(d_in,width)+act,
    depth x [Linear(width,width)+act], Linear(width,d_out)."""
    dims = [d_in] + [width] * (depth + 1) + [d_out]
    params = []
    for i in range(len(dims) - 1):
        key, kw, kb = jax.random.split(key, 3)
        fan_in = dims[i]
        W = jax.random.normal(kw, (dims[i], dims[i + 1]), jnp.float32) / math.sqrt(fan_in)
        b = jax.random.normal(kb, (dims[i + 1],), jnp.float32) * 0.01
        params.append((W, b))
    return params


def pack_params(params):
    """Pack the MLP into feature-major slabs.  Call ONCE and reuse (hoisted out
    of the forward path per review).

    Returns dict:
      w1c (C1, COND) bf16, w1z (C1, 2) bf16, b1 (C1, 1) f32   -- first layer
      wh  (D1, C1, C1) bf16, bh (D1, C1, 1) f32               -- hidden layers
      wl  (OUT_PAD, C1) bf16, bl (OUT_PAD, 1) f32             -- last layer (8 rows, 3 live)
    """
    (W1, b1), *hidden, (Wl, bl) = params
    assert W1.shape == (DIN, C1) and Wl.shape == (C1, DOUT) and len(hidden) >= 1

    w1c = jnp.asarray(W1[:COND, :].T, jnp.float32).astype(jnp.bfloat16)   # (C1, COND)
    w1z = jnp.asarray(W1[COND:, :].T, jnp.float32).astype(jnp.bfloat16)   # (C1, 2)
    b1p = jnp.asarray(b1, jnp.float32).reshape(C1, 1)

    whp = jnp.stack([W.T for (W, _) in hidden]).astype(jnp.bfloat16)      # (D1, C1, C1)
    bhp = jnp.stack([b.reshape(C1, 1) for (_, b) in hidden]).astype(jnp.float32)

    wlp = jnp.zeros((OUT_PAD, C1), jnp.float32).at[:DOUT, :].set(Wl.T).astype(jnp.bfloat16)
    blp = jnp.zeros((OUT_PAD, 1), jnp.float32).at[:DOUT, 0].set(bl)

    return dict(w1c=w1c, w1z=w1z, b1=b1p, wh=whp, bh=bhp, wl=wlp, bl=blp)


# ------------------------------------------------------------- Pallas kernel -
def make_neureparam_kernel(n_hidden, act_dtype):
    """Fused forward: (cond, z) -> mlp (SiLU hidden) -> [lin, softplus] -> normalize -> wi[:2].

    Feature-major refs:
      cond_ref (COND, tb) bf16, z_ref (2, tb) bf16,
      w1c (C1, COND) bf16, w1z (C1, 2) bf16, b1 (C1, 1) f32,
      wh (n_hidden, C1, C1) bf16, bh (n_hidden, C1, 1) f32,
      wl (OUT_PAD, C1) bf16, bl (OUT_PAD, 1) f32,
      out_ref (2, tb) f32.
    Matmuls: bf16 operands, f32 accumulate.  Bias add in f32, then SiLU in
    `act_dtype` (bf16 on v6e/v7x, f32 on v5e).
    """

    def silu_to_bf16(t_f32):
        ta = t_f32.astype(act_dtype)              # single cast after the f32 bias add
        return (ta * jax.nn.sigmoid(ta)).astype(jnp.bfloat16)   # bf16 MXU operand

    def kernel(cond_ref, z_ref, w1c_ref, w1z_ref, b1_ref,
               wh_ref, bh_ref, wl_ref, bl_ref, out_ref):
        # Layer 1: split matmul avoids any wrapper-side concat / zero-fill.
        t = (jnp.dot(w1c_ref[...], cond_ref[...], preferred_element_type=jnp.float32)
             + jnp.dot(w1z_ref[...], z_ref[...], preferred_element_type=jnp.float32)
             + b1_ref[...])                                       # (C1, tb) f32
        h = silu_to_bf16(t)

        for l in range(n_hidden):                                 # hidden C1->C1 layers
            t = jnp.dot(wh_ref[l], h, preferred_element_type=jnp.float32) + bh_ref[l]
            h = silu_to_bf16(t)

        # Last layer: only 8 output rows (rows 0,1 linear; row 2 softplus; 3..7 pad).
        t = jnp.dot(wl_ref[...], h, preferred_element_type=jnp.float32) + bl_ref[...]  # (8, tb) f32

        sp = jax.nn.softplus(t[2:3, :])
        sumsq = t[0:1, :] * t[0:1, :] + t[1:2, :] * t[1:2, :] + sp * sp
        inv = jax.lax.rsqrt(jnp.maximum(sumsq, 1e-24))            # == 1 / max(norm, 1e-12)
        out_ref[...] = t[0:2, :] * inv                            # lane-dense (2, tb) store

    return kernel


def neureparam_forward(cond, z, packed, *, tb=8192, act_dtype=None):
    """cond: (B, COND) f32, z: (B, 2) f32, packed = pack_params(params) -> wi: (B, 2) f32."""
    if act_dtype is None:
        act_dtype = default_act_dtype()

    B = cond.shape[0]
    assert cond.shape[1] == COND and z.shape == (B, 2)

    # Batch on the lane axis: pad to a multiple of 128, tile with large tiles.
    b_pad0 = pl.cdiv(B, 128) * 128
    tb_eff = min(tb, b_pad0)                  # no forced split for small batches (single-TC chips)
    grid = pl.cdiv(b_pad0, tb_eff)
    if grid > 1 and grid % 2 == 1 and _is_megacore():
        grid += 1                             # v7x: keep the parallel step count even (2 TCs)
    b_pad = grid * tb_eff

    # Feature-major bf16 inputs (one transpose+cast fusion each; no concat, no 32-row zero-fill).
    cond_t = cond.T.astype(jnp.bfloat16)      # (COND, B)
    z_t = z.T.astype(jnp.bfloat16)            # (2, B)
    if b_pad == B:
        cond_fm, z_fm = cond_t, z_t
    else:
        cond_fm = jnp.zeros((COND, b_pad), jnp.bfloat16).at[:, :B].set(cond_t)
        z_fm = jnp.zeros((2, b_pad), jnp.bfloat16).at[:, :B].set(z_t)

    n_hidden = packed["wh"].shape[0]
    kernel = make_neureparam_kernel(n_hidden, act_dtype)

    out_fm = pl.pallas_call(
        kernel,
        out_shape=jax.ShapeDtypeStruct((2, b_pad), jnp.float32),
        grid_spec=pltpu.PrefetchScalarGridSpec(
            num_scalar_prefetch=0,
            grid=(grid,),
            in_specs=[
                pl.BlockSpec((COND, tb_eff), lambda i: (0, i)),           # cond (feature-major)
                pl.BlockSpec((2, tb_eff), lambda i: (0, i)),              # z    (feature-major)
                pl.BlockSpec((C1, COND), lambda i: (0, 0)),               # W1 (cond part), resident
                pl.BlockSpec((C1, 2), lambda i: (0, 0)),                  # W1 (z part), resident
                pl.BlockSpec((C1, 1), lambda i: (0, 0)),                  # b1, resident
                pl.BlockSpec((n_hidden, C1, C1), lambda i: (0, 0, 0)),    # hidden W, resident
                pl.BlockSpec((n_hidden, C1, 1), lambda i: (0, 0, 0)),     # hidden b, resident
                pl.BlockSpec((OUT_PAD, C1), lambda i: (0, 0)),            # last W (8 rows), resident
                pl.BlockSpec((OUT_PAD, 1), lambda i: (0, 0)),             # last b (8 rows), resident
            ],
            out_specs=pl.BlockSpec((2, tb_eff), lambda i: (0, i)),
        ),
        compiler_params=pltpu.CompilerParams(
            dimension_semantics=("parallel",),
            vmem_limit_bytes=48 * 1024 * 1024,   # large tb headroom; < 64 MiB (v7x physical)
        ),
    )(cond_fm, z_fm, packed["w1c"], packed["w1z"], packed["b1"],
      packed["wh"], packed["bh"], packed["wl"], packed["bl"])

    return out_fm[:, :B].T                                       # (B, 2)


# ---------------------------------------------------------- pure-JAX reference
def neureparam_reference(cond, z, params, compute_dtype=jnp.float32, act_dtype=jnp.float32):
    x = jnp.concatenate([cond, z], axis=-1).astype(jnp.float32)
    h = x
    n = len(params)
    for li, (W, b) in enumerate(params):
        t = jnp.dot(h.astype(compute_dtype), W.astype(compute_dtype),
                    preferred_element_type=jnp.float32) + b
        if li < n - 1:
            ta = t.astype(act_dtype)
            h = (ta * jax.nn.sigmoid(ta)).astype(jnp.float32)
        else:
            h = t
    sp = jax.nn.softplus(h[:, 2:3])
    sumsq = h[:, 0:1] * h[:, 0:1] + h[:, 1:2] * h[:, 1:2] + sp * sp
    inv = jax.lax.rsqrt(jnp.maximum(sumsq, 1e-24))
    return h[:, :2] * inv


# --------------------------------------------------------------------- main --
if __name__ == "__main__":
    key = jax.random.PRNGKey(0)
    k_params, k_wo, k_u = jax.random.split(key, 3)

    B = 1024  # small demo batch; padded/tiled internally (no B % tb requirement)

    # deterministic parameters for self.mlp (the reparameterization network)
    params = init_mlp_params(k_params, DIN, DOUT, C1, D1)
    packed = pack_params(params)   # hoisted: packed once, reused for every forward call
    # TODO(synk): mlp2 (pdf network), detJ (autograd Jacobian determinant), and the
    # CUDA half-precision serialization paths (prepare/pdf_cond/sample_cond) are not
    # part of forward() and are not implemented here.

    # inputs: viewing direction wo -> cond via positional encoding; z via box-muller
    wo = jax.random.uniform(k_wo, (B, 2), jnp.float32, minval=-1.0, maxval=1.0)
    u2 = jax.random.uniform(k_u, (B, 2), jnp.float32, minval=1e-4, maxval=1.0)
    cond = encode_cond(wo)            # (B, 18)
    z = box_muller(u2)                # (B, 2)

    act_dtype = default_act_dtype()
    wi = neureparam_forward(cond, z, packed, act_dtype=act_dtype)
    wi = jax.block_until_ready(wi)
    assert wi.shape == (B, 2)

    # matched-precision reference (bf16 matmul operands, f32 accumulate, same act dtype)
    wi_ref_matched = neureparam_reference(cond, z, params,
                                          compute_dtype=jnp.bfloat16, act_dtype=act_dtype)
    assert jnp.allclose(wi, wi_ref_matched, atol=2e-3, rtol=2e-3), "mismatch vs matched reference"

    # full-f32 reference sanity check (loose tolerance for bf16 matmul operands/activations)
    wi_ref_f32 = neureparam_reference(cond, z, params,
                                      compute_dtype=jnp.float32, act_dtype=jnp.float32)
    assert jnp.allclose(wi, wi_ref_f32, atol=5e-2, rtol=5e-2), "mismatch vs f32 reference"

    print("KERNEL_OK")
</pallas_src>

<mosaic_0001>
module attributes {stable_mosaic.version = 11 : i64} {
  func.func @kernel(%arg0: i32, %arg1: memref<18x1024xbf16, #tpu.memory_space<vmem>>, %arg2: memref<2x1024xbf16, #tpu.memory_space<vmem>>, %arg3: memref<32x18xbf16, #tpu.memory_space<vmem>>, %arg4: memref<32x2xbf16, #tpu.memory_space<vmem>>, %arg5: memref<32x1xf32, #tpu.memory_space<vmem>>, %arg6: memref<1x32x32xbf16, #tpu.memory_space<vmem>>, %arg7: memref<1x32x1xf32, #tpu.memory_space<vmem>>, %arg8: memref<8x32xbf16, #tpu.memory_space<vmem>>, %arg9: memref<8x1xf32, #tpu.memory_space<vmem>>, %arg10: memref<2x1024xf32, #tpu.memory_space<vmem>>) attributes {dimension_semantics = [#tpu.dimension_semantics<parallel>], iteration_bounds = array<i64: 1>, scalar_prefetch = 0 : i64, scratch_operands = 0 : i64, tpu.core_type = #tpu.core_type<tc>, window_params = [{transform_indices = @transform_0, window_bounds = array<i64: 18, 1024>}, {transform_indices = @transform_1, window_bounds = array<i64: 2, 1024>}, {pipeline_mode = #tpu.pipeline_mode<synchronous>, transform_indices = @transform_2, window_bounds = array<i64: 32, 18>}, {pipeline_mode = #tpu.pipeline_mode<synchronous>, transform_indices = @transform_3, window_bounds = array<i64: 32, 2>}, {pipeline_mode = #tpu.pipeline_mode<synchronous>, transform_indices = @transform_4, window_bounds = array<i64: 32, 1>}, {pipeline_mode = #tpu.pipeline_mode<synchronous>, transform_indices = @transform_5, window_bounds = array<i64: 1, 32, 32>}, {pipeline_mode = #tpu.pipeline_mode<synchronous>, transform_indices = @transform_6, window_bounds = array<i64: 1, 32, 1>}, {pipeline_mode = #tpu.pipeline_mode<synchronous>, transform_indices = @transform_7, window_bounds = array<i64: 8, 32>}, {pipeline_mode = #tpu.pipeline_mode<synchronous>, transform_indices = @transform_8, window_bounds = array<i64: 8, 1>}, {transform_indices = @transform_9, window_bounds = array<i64: 2, 1024>}]} {
    %c0 = arith.constant 0 : index
    %c0_0 = arith.constant 0 : index
    %0 = vector.load %arg3[%c0, %c0_0] : memref<32x18xbf16, #tpu.memory_space<vmem>>, vector<32x18xbf16>
    %c0_1 = arith.constant 0 : index
    %c0_2 = arith.constant 0 : index
    %1 = vector.load %arg1[%c0_1, %c0_2] : memref<18x1024xbf16, #tpu.memory_space<vmem>>, vector<18x1024xbf16>
    %cst = arith.constant dense<0.000000e+00> : vector<32x1024xf32>
    %2 = tpu.matmul %0, %1, %cst {dimension_numbers = #tpu.dot_dimension_numbers<[1], [0], [0], [1], [0, 0, 1, 1], [], []>} : vector<32x18xbf16>, vector<18x1024xbf16>, vector<32x1024xf32> -> vector<32x1024xf32>
    %c0_3 = arith.constant 0 : index
    %c0_4 = arith.constant 0 : index
    %3 = vector.load %arg4[%c0_3, %c0_4] : memref<32x2xbf16, #tpu.memory_space<vmem>>, vector<32x2xbf16>
    %c0_5 = arith.constant 0 : index
    %c0_6 = arith.constant 0 : index
    %4 = vector.load %arg2[%c0_5, %c0_6] : memref<2x1024xbf16, #tpu.memory_space<vmem>>, vector<2x1024xbf16>
    %cst_7 = arith.constant dense<0.000000e+00> : vector<32x1024xf32>
    %5 = tpu.matmul %3, %4, %cst_7 {dimension_numbers = #tpu.dot_dimension_numbers<[1], [0], [0], [1], [0, 0, 1, 1], [], []>} : vector<32x2xbf16>, vector<2x1024xbf16>, vector<32x1024xf32> -> vector<32x1024xf32>
    %6 = arith.addf %2, %5 : vector<32x1024xf32>
    %c0_8 = arith.constant 0 : index
    %c0_9 = arith.constant 0 : index
    %7 = vector.load %arg5[%c0_8, %c0_9] : memref<32x1xf32, #tpu.memory_space<vmem>>, vector<32x1xf32>
    %8 = vector.broadcast %7 : vector<32x1xf32> to vector<32x1024xf32>
    %9 = arith.addf %6, %8 : vector<32x1024xf32>
    %10 = arith.truncf %9 : vector<32x1024xf32> to vector<32x1024xbf16>
    %11 = arith.negf %10 : vector<32x1024xbf16>
    %12 = math.exp %11 : vector<32x1024xbf16>
    %cst_10 = arith.constant 1.000000e+00 : bf16
    %13 = vector.broadcast %cst_10 : bf16 to vector<32x1024xbf16>
    %14 = arith.addf %13, %12 : vector<32x1024xbf16>
    %15 = arith.divf %13, %14 : vector<32x1024xbf16>
    %16 = arith.mulf %10, %15 : vector<32x1024xbf16>
    %c0_11 = arith.constant 0 : index
    %c0_12 = arith.constant 0 : index
    %c0_13 = arith.constant 0 : index
    %17 = vector.load %arg6[%c0_11, %c0_12, %c0_13] : memref<1x32x32xbf16, #tpu.memory_space<vmem>>, vector<1x32x32xbf16>
    %18 = vector.shape_cast %17 : vector<1x32x32xbf16> to vector<32x32xbf16>
    %cst_14 = arith.constant dense<0.000000e+00> : vector<32x1024xf32>
    %19 = tpu.matmul %18, %16, %cst_14 {dimension_numbers = #tpu.dot_dimension_numbers<[1], [0], [0], [1], [0, 0, 1, 1], [], []>} : vector<32x32xbf16>, vector<32x1024xbf16>, vector<32x1024xf32> -> vector<32x1024xf32>
    %c0_15 = arith.constant 0 : index
    %c0_16 = arith.constant 0 : index
    %c0_17 = arith.constant 0 : index
    %20 = vector.load %arg7[%c0_15, %c0_16, %c0_17] : memref<1x32x1xf32, #tpu.memory_space<vmem>>, vector<1x32x1xf32>
    %21 = vector.shape_cast %20 : vector<1x32x1xf32> to vector<32x1xf32>
    %22 = vector.broadcast %21 : vector<32x1xf32> to vector<32x1024xf32>
    %23 = arith.addf %19, %22 : vector<32x1024xf32>
    %24 = arith.truncf %23 : vector<32x1024xf32> to vector<32x1024xbf16>
    %25 = arith.negf %24 : vector<32x1024xbf16>
    %26 = math.exp %25 : vector<32x1024xbf16>
    %cst_18 = arith.constant 1.000000e+00 : bf16
    %27 = vector.broadcast %cst_18 : bf16 to vector<32x1024xbf16>
    %28 = arith.addf %27, %26 : vector<32x1024xbf16>
    %29 = arith.divf %27, %28 : vector<32x1024xbf16>
    %30 = arith.mulf %24, %29 : vector<32x1024xbf16>
    %c0_19 = arith.constant 0 : index
    %c0_20 = arith.constant 0 : index
    %31 = vector.load %arg8[%c0_19, %c0_20] : memref<8x32xbf16, #tpu.memory_space<vmem>>, vector<8x32xbf16>
    %cst_21 = arith.constant dense<0.000000e+00> : vector<8x1024xf32>
    %32 = tpu.matmul %31, %30, %cst_21 {dimension_numbers = #tpu.dot_dimension_numbers<[1], [0], [0], [1], [0, 0, 1, 1], [], []>} : vector<8x32xbf16>, vector<32x1024xbf16>, vector<8x1024xf32> -> vector<8x1024xf32>
    %c0_22 = arith.constant 0 : index
    %c0_23 = arith.constant 0 : index
    %33 = vector.load %arg9[%c0_22, %c0_23] : memref<8x1xf32, #tpu.memory_space<vmem>>, vector<8x1xf32>
    %34 = vector.broadcast %33 : vector<8x1xf32> to vector<8x1024xf32>
    %35 = arith.addf %32, %34 : vector<8x1024xf32>
    %36 = vector.extract_strided_slice %35 {offsets = [2, 0], sizes = [1, 1024], strides = [1, 1]} : vector<8x1024xf32> to vector<1x1024xf32>
    %cst_24 = arith.constant 0.000000e+00 : f32
    %37 = vector.broadcast %cst_24 : f32 to vector<1x1024xf32>
    %38 = arith.maximumf %36, %37 : vector<1x1024xf32>
    %39 = vector.broadcast %cst_24 : f32 to vector<1x1024xf32>
    %40 = arith.subf %36, %39 : vector<1x1024xf32>
    %41 = arith.cmpf one, %40, %40 : vector<1x1024xf32>
    %42 = vector.broadcast %cst_24 : f32 to vector<1x1024xf32>
    %43 = arith.addf %36, %42 : vector<1x1024xf32>
    %44 = math.absf %40 : vector<1x1024xf32>
    %cst_25 = arith.constant 0.000000e+00 : f32
    %45 = vector.broadcast %cst_25 : f32 to vector<1x1024xf32>
    %46 = arith.subf %45, %44 : vector<1x1024xf32>
    %47 = math.exp %46 : vector<1x1024xf32>
    %48 = math.log1p %47 : vector<1x1024xf32>
    %49 = arith.addf %38, %48 : vector<1x1024xf32>
    %50 = arith.select %41, %43, %49 : vector<1x1024xi1>, vector<1x1024xf32>
    %51 = vector.extract_strided_slice %35 {offsets = [0, 0], sizes = [1, 1024], strides = [1, 1]} : vector<8x1024xf32> to vector<1x1024xf32>
    %52 = vector.extract_strided_slice %35 {offsets = [0, 0], sizes = [1, 1024], strides = [1, 1]} : vector<8x1024xf32> to vector<1x1024xf32>
    %53 = arith.mulf %51, %52 : vector<1x1024xf32>
    %54 = vector.extract_strided_slice %35 {offsets = [1, 0], sizes = [1, 1024], strides = [1, 1]} : vector<8x1024xf32> to vector<1x1024xf32>
    %55 = vector.extract_strided_slice %35 {offsets = [1, 0], sizes = [1, 1024], strides = [1, 1]} : vector<8x1024xf32> to vector<1x1024xf32>
    %56 = arith.mulf %54, %55 : vector<1x1024xf32>
    %57 = arith.addf %53, %56 : vector<1x1024xf32>
    %58 = arith.mulf %50, %50 : vector<1x1024xf32>
    %59 = arith.addf %57, %58 : vector<1x1024xf32>
    %cst_26 = arith.constant 1.000000e-24 : f32
    %60 = vector.broadcast %cst_26 : f32 to vector<1x1024xf32>
    %61 = arith.maximumf %59, %60 : vector<1x1024xf32>
    %62 = math.rsqrt %61 : vector<1x1024xf32>
    %63 = vector.extract_strided_slice %35 {offsets = [0, 0], sizes = [2, 1024], strides = [1, 1]} : vector<8x1024xf32> to vector<2x1024xf32>
    %64 = vector.broadcast %62 : vector<1x1024xf32> to vector<2x1024xf32>
    %65 = arith.mulf %63, %64 : vector<2x1024xf32>
    %c0_27 = arith.constant 0 : index
    %c0_28 = arith.constant 0 : index
    %66 = vector.load %arg10[%c0_27, %c0_28] : memref<2x1024xf32, #tpu.memory_space<vmem>>, vector<2x1024xf32>
    tpu.vector_store %arg10[%c0_27, %c0_28], %65 {strides = array<i32>} : memref<2x1024xf32, #tpu.memory_space<vmem>>, vector<2x1024xf32>,
    return
  }
  func.func @transform_0(%arg0: i32) -> (i32, i32) {
    %c0_i32 = arith.constant 0 : i32
    %c0_i32_0 = arith.constant 0 : i32
    return %c0_i32, %arg0 : i32, i32
  }
  func.func @transform_1(%arg0: i32) -> (i32, i32) {
    %c0_i32 = arith.constant 0 : i32
    %c0_i32_0 = arith.constant 0 : i32
    return %c0_i32, %arg0 : i32, i32
  }
  func.func @transform_2(%arg0: i32) -> (i32, i32) {
    %c0_i32 = arith.constant 0 : i32
    %c0_i32_0 = arith.constant 0 : i32
    %c0_i32_1 = arith.constant 0 : i32
    return %c0_i32, %c0_i32_0 : i32, i32
  }
  func.func @transform_3(%arg0: i32) -> (i32, i32) {
    %c0_i32 = arith.constant 0 : i32
    %c0_i32_0 = arith.constant 0 : i32
    %c0_i32_1 = arith.constant 0 : i32
    return %c0_i32, %c0_i32_0 : i32, i32
  }
  func.func @transform_4(%arg0: i32) -> (i32, i32) {
    %c0_i32 = arith.constant 0 : i32
    %c0_i32_0 = arith.constant 0 : i32
    %c0_i32_1 = arith.constant 0 : i32
    return %c0_i32, %c0_i32_0 : i32, i32
  }
  func.func @transform_5(%arg0: i32) -> (i32, i32, i32) {
    %c0_i32 = arith.constant 0 : i32
    %c0_i32_0 = arith.constant 0 : i32
    %c0_i32_1 = arith.constant 0 : i32
    %c0_i32_2 = arith.constant 0 : i32
    return %c0_i32, %c0_i32_0, %c0_i32_1 : i32, i32, i32
  }
  func.func @transform_6(%arg0: i32) -> (i32, i32, i32) {
    %c0_i32 = arith.constant 0 : i32
    %c0_i32_0 = arith.constant 0 : i32
    %c0_i32_1 = arith.constant 0 : i32
    %c0_i32_2 = arith.constant 0 : i32
    return %c0_i32, %c0_i32_0, %c0_i32_1 : i32, i32, i32
  }
  func.func @transform_7(%arg0: i32) -> (i32, i32) {
    %c0_i32 = arith.constant 0 : i32
    %c0_i32_0 = arith.constant 0 : i32
    %c0_i32_1 = arith.constant 0 : i32
    return %c0_i32, %c0_i32_0 : i32, i32
  }
  func.func @transform_8(%arg0: i32) -> (i32, i32) {
    %c0_i32 = arith.constant 0 : i32
    %c0_i32_0 = arith.constant 0 : i32
    %c0_i32_1 = arith.constant 0 : i32
    return %c0_i32, %c0_i32_0 : i32, i32
  }
  func.func @transform_9(%arg0: i32) -> (i32, i32) {
    %c0_i32 = arith.constant 0 : i32
    %c0_i32_0 = arith.constant 0 : i32
    return %c0_i32, %arg0 : i32, i32
  }
}

</mosaic_0001>

<bundles_post_ra>
// kernel: tpu_custom_call.1
= control target key start
LH: loop header
LB: loop body
LE: loop exit
PB: predicated region body
PF: predicated region fallthrough
CT: control target
= control target key end

     0   :  { %v71_v0 = vlaneseq  ;;  %v2097_v1 = vmov 1966171168   ;;  %v2098_v3 = vmov 0   ;;  %vm123_vm0 = vcmask 1040384   ;;  %s2757_s0 = inlined_call_operand.vmem [shape: bf16[18,1024], index: 0, kind: input, shape index: {}]   ;;  %s2758_s1 = inlined_call_operand.vmem [shape: bf16[2,1024], index: 1, kind: input, shape index: {}]   ;;  %s2759_s2 = inlined_call_operand.vmem [shape: bf16[32,18], index: 2, kind: input, shape index: {}]   ;;  %s2760_s3 = inlined_call_operand.vmem [shape: bf16[32,2], index: 3, kind: input, shape index: {}]   ;;  %s2761_s4 = inlined_call_operand.vmem [shape: f32[32,1], index: 4, kind: input, shape index: {}]   ;;  %s2762_s5 = inlined_call_operand.vmem [shape: bf16[1,32,32], index: 5, kind: input, shape index: {}]   ;;  %s2763_s6 = inlined_call_operand.vmem [shape: f32[1,32,1], index: 6, kind: input, shape index: {}]   ;;  %s2764_s7 = inlined_call_operand.vmem [shape: bf16[8,32], index: 7, kind: input, shape index: {}]   ;;  %s2765_s8 = inlined_call_operand.vmem [shape: f32[8,1], index: 8, kind: input, shape index: {}]   ;;  %s2766_s9 = inlined_call_operand.hbm [shape: f32[2,1024], index: 9, kind: output, shape index: {}]  }
   0x1   :  { %v69_v2 = vunpack.c.l.s4 %v2097_v1  ;;  %180 = vmatprep.mubr.bf16.mxu0 %v2098_v3  ;;  %233 = vmatprep.mubr.bf16.mxu1 %v2098_v3  ;;  %v55_v4 = vld [vmem:[%s2758_s1] sm:$0xff]  ;;  %v675_v11 = vld [vmem:[%s2761_s4 + $0x10] sm:$0xff]  ;;  %v676_v17 = vld [vmem:[%s2761_s4 + $0x18] sm:$0xff] }
   0x2   :  { %v2156_v5 = vshrl.u32 %v71_v0, 7  ;;  %1882 = vset.pattern.permute.xlu0 %v2098_v3  ;;  %1883 = vset.pattern.permute.xlu1 %v2098_v3  ;;  %v67_v6 = vcombine.high %v55_v4, %v55_v4  ;;  %v673_v16 = vld [vmem:[%s2761_s4] sm:$0xff]  ;;  %v674_v22 = vld [vmem:[%s2761_s4 + $0x8] sm:$0xff] }
   0x3   :  { %v70_v7 = vunpack.c.0.s8 %v69_v2  ;;  %689 = vperm.xlu0 %1882, %v675_v11   ;;  %679 = vperm.xlu1 %1883, %v673_v16   ;;  %v47_v23 = vld [vmem:[%s2757_s0 + $0x40] sm:$0x11] }
   0x4   :  { %v1885_v26 = vld [vmem:[%s2760_s3] sm:$0xff]  }
   0x5   :  { %v73_v8 = vsub.s32 %v70_v7, %v2156_v5 }
   0x7   :  { %v74_v9 = vrot.slane %v55_v4, %v73_v8  ;;  %v81_v10 = vrot.slane %v67_v6, %v73_v8  ;;  %694 = vperm.xlu0 %1882, %v676_v17  }
   0x9   :  { %v82_v12 = vcombine.high %v74_v9, %v74_v9  ;;  %v90_v13 = vrot.slane %v74_v9, %v73_v8  ;;  %v83_v14 = vcombine.high %v81_v10, %v81_v10  ;;  %v97_v15 = vrot.slane %v81_v10, %v73_v8 }
   0xb   :  { %v104_v18 = vrot.slane %v82_v12, %v73_v8  ;;  %v125_v19 = vsel %vm123_vm0, %v90_v13, 0  ;;  %v112_v20 = vcombine.high %v90_v13, %v90_v13  ;;  %v111_v21 = vrot.slane %v83_v14, %v73_v8 }
   0xc   :  { %v113_v28 = vcombine.high %v97_v15, %v97_v15 }
   0xd   :  { %1790 = vmatprep.subr.msk.bf16.mxu0 %vm123_vm0, %v104_v18  ;;  %v114_v24 = vcombine.high %v104_v18, %v104_v18  ;;  %v131_v25 = vsel %vm123_vm0, %v112_v20, 0  ;;  %v115_v27 = vcombine.high %v111_v21, %v111_v21 }
   0xe   :  { %14 = vsyncpa [#allocation3], 0  ;;  %163 = vmatpush1.bf16.msra.mxu0 %v125_v19  ;;  %vm116_vm1 = vcmask 15360   ;;  %v48_v29 = vld [vmem:[%s2757_s0 + $0x48] sm:$0x11]  ;;  %684 = vperm.xlu1 %1883, %v674_v22   ;;  %v137_v30 = vsel %vm123_vm0, %v97_v15, 0  ;;  %v1813_v31 = vcombine.high %v47_v23, %v47_v23  ;;  %v1812_v40 = vcombine.low %v47_v23, %v47_v23 }
   0xf   :  { %1793 = vmatprep.subr.msk.bf16.mxu1 %vm123_vm0, %v114_v24  ;;  %1796 = vmatprep.subr.msk.bf16.mxu0 %vm123_vm0, %v111_v21  ;;  %v143_v32 = vsel %vm123_vm0, %v113_v28, 0  ;;  %v1815_v33 = vcombine.high %v48_v29, %v48_v29  ;;  %v879_v34 = vld [vmem:[%s2763_s6 + $0x10] sm:$0xff]  ;;  %v880_v35 = vld [vmem:[%s2763_s6 + $0x18] sm:$0xff]  ;;  %v1886_v36 = vld [vmem:[%s2760_s3 + $0x8] sm:$0xff]   ;;  %v1814_v43 = vcombine.low %v48_v29, %v48_v29  ;;  %vm430_vm2 = vcmask 146432  }
  0x10   :  { %216 = vmatpush1.bf16.msra.mxu1 %v131_v25  ;;  %893 = vperm.xlu0 %1882, %v879_v34   ;;  %v877_v37 = vld [vmem:[%s2763_s6] sm:$0xff]  ;;  %v878_v38 = vld [vmem:[%s2763_s6 + $0x8] sm:$0xff]  ;;  %v438_v46 = vsel %vm123_vm0, %v1812_v40, 0  ;;  %v49_v48 = vld [vmem:[%s2757_s0 + $0x50] sm:$0x11]  ;;  %vm911_vm3 = vcmask 261120  }
  0x11   :  { %1791 = vmatmul.mubr.msk.bf16.vlgmr.msra.gmra.mxu0 %vm116_vm1, %v1885_v26  ;;  %1799 = vmatprep.subr.msk.bf16.mxu1 %vm123_vm0, %v115_v27  ;;  %v1275_v39 = vld [vmem:[%s2765_s8] sm:$0xff]  ;;  %v40_v44 = vld [vmem:[%s2757_s0 + $0x8] sm:$0xff]  ;;  %v444_v49 = vsel %vm123_vm0, %v1814_v43, 0  ;;  %v50_v52 = vld [vmem:[%s2757_s0 + $0x58] sm:$0x11]  ;;  %v1817_v53 = vcombine.high %v49_v48, %v49_v48  ;;  %v1816_v56 = vcombine.low %v49_v48, %v49_v48 }
  0x12   :  { %190 = vmatprep.mubr.bf16.mxu0 %v2098_v3  ;;  %269 = vmatpush1.bf16.msra.mxu0 %v137_v30  ;;  %v39_v41 = vld [vmem:[%s2757_s0] sm:$0xff]  ;;  %v44_v45 = vld [vmem:[%s2757_s0 + $0x28] sm:$0xff]  ;;  %v1819_v55 = vcombine.high %v50_v52, %v50_v52  ;;  %v41_v57 = vld [vmem:[%s2757_s0 + $0x10] sm:$0xff]  ;;  %v1818_v60 = vcombine.low %v50_v52, %v50_v52 }
  0x13   :  { %1794 = vmatmul.mubr.msk.bf16.vlgmr.msra.gmra.mxu1 %vm116_vm1, %v1885_v26  ;;  %1820 = vmatprep.subr.msk.bf16.mxu0 %vm123_vm0, %v1813_v31  ;;  %v43_v42 = vld [vmem:[%s2757_s0 + $0x20] sm:$0xff]  ;;  %v1807_v50 = vcombine.high %v40_v44, %v44_v45  ;;  %v1806_v54 = vcombine.low %v40_v44, %v44_v45  ;;  %v45_v58 = vld [vmem:[%s2757_s0 + $0x30] sm:$0xff]  ;;  %v42_v61 = vld [vmem:[%s2757_s0 + $0x18] sm:$0xff]  ;;  %v450_v63 = vsel %vm123_vm0, %v1816_v56, 0 }
  0x14   :  { %243 = vmatprep.mubr.bf16.mxu1 %v2098_v3  ;;  %322 = vmatpush1.bf16.msra.mxu1 %v143_v32  ;;  %v1805_v47 = vcombine.high %v39_v41, %v43_v42  ;;  %v1804_v51 = vcombine.low %v39_v41, %v43_v42  ;;  %v1891_v59 = vld [vmem:[%s2759_s2] sm:$0xff]   ;;  %v46_v62 = vld [vmem:[%s2757_s0 + $0x38] sm:$0xff]  ;;  %v1809_v0 = vcombine.high %v41_v57, %v45_v58  ;;  %v456_v1 = vsel %vm123_vm0, %v1818_v60, 0  ;;  %v1892_v7 = vld [vmem:[%s2759_s2 + $0x8] sm:$0xff]  }
  0x15   :  { %1823 = vmatprep.subr.msk.bf16.mxu1 %vm123_vm0, %v1815_v33  ;;  %898 = vperm.xlu1 %1883, %v880_v35   ;;  %v1811_v2 = vcombine.high %v42_v61, %v46_v62  ;;  %v1808_v4 = vcombine.low %v41_v57, %v45_v58  ;;  %v1810_v6 = vcombine.low %v42_v61, %v46_v62 }
  0x16   :  { %883 = vperm.xlu0 %1882, %v877_v37  }
  0x19   :  { %1792 = vmatmul.mubr.msk.bf16.gmra.mxu0 %vm116_vm1, %v1886_v36  ;;  %888 = vperm.xlu1 %1883, %v878_v38  }
  0x1a   :  { %286 = vmatprep.mubr.bf16.mxu0 %v2098_v3  ;;  %1278 = vperm.xlu0 %1882, %v1275_v39  }
  0x1b   :  { %1795 = vmatmul.mubr.msk.bf16.gmra.mxu1 %vm116_vm1, %v1886_v36 }
  0x1c   :  { %339 = vmatprep.mubr.bf16.mxu1 %v2098_v3 }
  0x21   :  { %1797 = vmatmul.mubr.msk.bf16.vlgmr.msra.gmra.mxu0 %vm116_vm1, %v1885_v26 }
  0x22   :  { %296 = vmatprep.mubr.bf16.mxu0 %v2098_v3  ;;  %474 = vmatpush1.bf16.msra.mxu0 %v438_v46 }
  0x23   :  { %1800 = vmatmul.mubr.msk.bf16.vlgmr.msra.gmra.mxu1 %vm116_vm1, %v1885_v26  ;;  %475 = vmatprep.subr.bf16.mxu0 %v1805_v47 }
  0x24   :  { %349 = vmatprep.mubr.bf16.mxu1 %v2098_v3  ;;  %527 = vmatpush1.bf16.msra.mxu1 %v444_v49 }
  0x25   :  { %528 = vmatprep.subr.bf16.mxu1 %v1807_v50 }
  0x26   :  { %476 = vmatpush1.bf16.msra.mxu0 %v1804_v51 }
  0x27   :  { %1826 = vmatprep.subr.msk.bf16.mxu0 %vm123_vm0, %v1817_v53 }
  0x28   :  { %529 = vmatpush1.bf16.msra.mxu1 %v1806_v54 }
  0x29   :  { %1798 = vmatmul.mubr.msk.bf16.gmra.mxu0 %vm116_vm1, %v1886_v36  ;;  %1829 = vmatprep.subr.msk.bf16.mxu1 %vm123_vm0, %v1819_v55 }
  0x2a   :  { %493 = vmatprep.mubr.bf16.mxu0 %v2098_v3 }
  0x2b   :  { %1801 = vmatmul.mubr.msk.bf16.gmra.mxu1 %vm116_vm1, %v1886_v36 }
  0x2c   :  { %546 = vmatprep.mubr.bf16.mxu1 %v2098_v3 }
  0x31   :  { %1821 = vmatmul.mubr.msk.bf16.vlgmr.msra.gmra.mxu0 %vm430_vm2, %v1891_v59 }
  0x32   :  { %503 = vmatprep.mubr.bf16.mxu0 %v2098_v3  ;;  %580 = vmatpush1.bf16.msra.mxu0 %v450_v63 }
  0x33   :  { %1824 = vmatmul.mubr.msk.bf16.vlgmr.msra.gmra.mxu1 %vm430_vm2, %v1891_v59  ;;  %581 = vmatprep.subr.bf16.mxu0 %v1809_v0 }
  0x34   :  { %556 = vmatprep.mubr.bf16.mxu1 %v2098_v3  ;;  %633 = vmatpush1.bf16.msra.mxu1 %v456_v1 }
  0x35   :  { %634 = vmatprep.subr.bf16.mxu1 %v1811_v2 }
  0x36   :  { %582 = vmatpush1.bf16.msra.mxu0 %v1808_v4 }
  0x38   :  { %635 = vmatpush1.bf16.msra.mxu1 %v1810_v6 }
  0x39   :  { %1822 = vmatmul.mubr.msk.bf16.gmra.mxu0 %vm430_vm2, %v1892_v7 }
  0x3a   :  { %599 = vmatprep.mubr.bf16.mxu0 %v2098_v3 }
  0x3b   :  { %1825 = vmatmul.mubr.msk.bf16.gmra.mxu1 %vm430_vm2, %v1892_v7 }
  0x3c   :  { %652 = vmatprep.mubr.bf16.mxu1 %v2098_v3 }
  0x41   :  { %1827 = vmatmul.mubr.msk.bf16.vlgmr.msra.gmra.mxu0 %vm430_vm2, %v1891_v59 }
  0x42   :  { %609 = vmatprep.mubr.bf16.mxu0 %v2098_v3 }
  0x43   :  { %1830 = vmatmul.mubr.msk.bf16.vlgmr.msra.gmra.mxu1 %vm430_vm2, %v1891_v59 }
  0x44   :  { %662 = vmatprep.mubr.bf16.mxu1 %v2098_v3 }
  0x49   :  { %1828 = vmatmul.mubr.msk.bf16.gmra.mxu0 %vm430_vm2, %v1892_v7 }
  0x4a   :  { %950 = vmatprep.mubr.bf16.mxu0 %v2098_v3 }
  0x4b   :  { %1831 = vmatmul.mubr.msk.bf16.gmra.mxu1 %vm430_vm2, %v1892_v7 }
  0x4c   :  { %1003 = vmatprep.mubr.bf16.mxu1 %v2098_v3 }
  0x7e   :  { %v2324_v39 = vpop.permute.xlu1 %679  ;;  %v2330_v53 = vpop.permute.xlu0 %689 }
  0x89   :  { %v2328_v49 = vpop.permute.xlu1 %684 }
  0xd1   :  { %v182_v8 = vpop.f32.mrf.mxu0 }
  0xd3   :  { %v184_v9 = vpop.f32.mrf.mxu0  ;;  %v235_v10 = vpop.f32.mrf.mxu1 }
  0xd5   :  { %v186_v11 = vpop.f32.mrf.mxu0  ;;  %v237_v12 = vpop.f32.mrf.mxu1 }
  0xd7   :  { %v188_v13 = vpop.f32.mrf.mxu0  ;;  %v239_v14 = vpop.f32.mrf.mxu1 }
  0xd9   :  { %v192_v15 = vpop.f32.mrf.mxu0  ;;  %v241_v16 = vpop.f32.mrf.mxu1 }
  0xdb   :  { %v194_v17 = vpop.f32.mrf.mxu0  ;;  %v2284_v18 = vpop.f32.mrf.mxu1 }
  0xdd   :  { %v196_v19 = vpop.f32.mrf.mxu0  ;;  %v2286_v20 = vpop.f32.mrf.mxu1 }
  0xdf   :  { %v2288_v21 = vpop.f32.mrf.mxu0  ;;  %v2290_v22 = vpop.f32.mrf.mxu1 }
  0xe1   :  { %v2292_v23 = vpop.f32.mrf.mxu1  ;;  %v2294_v24 = vpop.f32.mrf.mxu0 }
  0xe3   :  { %v2296_v25 = vpop.f32.mrf.mxu0  ;;  %v2298_v26 = vpop.f32.mrf.mxu1 }
  0xe5   :  { %v2300_v27 = vpop.f32.mrf.mxu0  ;;  %v2302_v28 = vpop.f32.mrf.mxu1 }
  0xe7   :  { %v2304_v29 = vpop.f32.mrf.mxu0  ;;  %v2306_v30 = vpop.f32.mrf.mxu1 }
  0xe9   :  { %v2308_v31 = vpop.f32.mrf.mxu0  ;;  %v2310_v32 = vpop.f32.mrf.mxu1 }
  0xeb   :  { %v2312_v33 = vpop.f32.mrf.mxu0  ;;  %v2314_v34 = vpop.f32.mrf.mxu1 }
  0xed   :  { %v2316_v35 = vpop.f32.mrf.mxu0  ;;  %v2318_v36 = vpop.f32.mrf.mxu1 }
  0xef   :  { %v2320_v37 = vpop.f32.mrf.mxu0  ;;  %v2322_v38 = vpop.f32.mrf.mxu1 }
  0xf1   :  { %v2326_v40 = vpop.f32.mrf.mxu1  ;;  %v495_v41 = vpop.f32.mrf.mxu0 }
  0xf2   :  { %v496_v50 = vadd.f32 %v495_v41, %v182_v8  ;;  %v2346_v41 = vpop.permute.xlu0 %694 }
  0xf3   :  { %v497_v42 = vpop.f32.mrf.mxu0  ;;  %v548_v43 = vpop.f32.mrf.mxu1 }
  0xf4   :  { %v498_v44 = vadd.f32 %v497_v42, %v184_v9  ;;  %v549_v47 = vadd.f32 %v548_v43, %v235_v10  ;;  %v697_v4 = vadd.f32 %v2324_v39, %v496_v50 }
  0xf5   :  { %v499_v45 = vpop.f32.mrf.mxu0  ;;  %v550_v46 = vpop.f32.mrf.mxu1 }
  0xf6   :  { %v500_v48 = vadd.f32 %v499_v45, %v186_v11  ;;  %v698_v56 = vadd.f32 %v2324_v39, %v498_v44  ;;  %v551_v57 = vadd.f32 %v550_v46, %v237_v12  ;;  %v699_v61 = vadd.f32 %v2324_v39, %v549_v47 }
  0xf7   :  { %v501_v51 = vpop.f32.mrf.mxu0  ;;  %v552_v52 = vpop.f32.mrf.mxu1 }
  0xf8   :  { %v502_v54 = vadd.f32 %v501_v51, %v188_v13  ;;  %v553_v55 = vadd.f32 %v552_v52, %v239_v14  ;;  %v705_v60 = vadd.f32 %v2328_v49, %v500_v48  ;;  %v700_v10 = vadd.f32 %v2324_v39, %v551_v57 }
  0xf9   :  { %v505_v58 = vpop.f32.mrf.mxu0  ;;  %v554_v59 = vpop.f32.mrf.mxu1 }
  0xfa   :  { %v706_v62 = vadd.f32 %v2328_v49, %v502_v54  ;;  %v707_v63 = vadd.f32 %v2328_v49, %v553_v55  ;;  %v555_v0 = vadd.f32 %v554_v59, %v241_v16  ;;  %v506_v8 = vadd.f32 %v505_v58, %v192_v15 }
  0xfb   :  { %v507_v1 = vpop.f32.mrf.mxu0  ;;  %v558_v2 = vpop.f32.mrf.mxu1  ;;  %v2344_v14 = vpack.c.bf16 %v705_v60, %v697_v4 }
  0xfc   :  { %v2338_v6 = vpack.c.bf16 %v706_v62, %v698_v56  ;;  %v2340_v7 = vpack.c.bf16 %v707_v63, %v699_v61  ;;  %v708_v9 = vadd.f32 %v2328_v49, %v555_v0  ;;  %v508_v11 = vadd.f32 %v507_v1, %v194_v17 }
  0xfd   :  { %v509_v12 = vpop.f32.mrf.mxu0  ;;  %v560_v13 = vpop.f32.mrf.mxu1  ;;  %v559_v15 = vadd.f32 %v558_v2, %v2284_v18  ;;  %v713_v47 = vadd.f32 %v2330_v53, %v506_v8  ;;  %v1832_v55 = vmul.bf16 3216621497, %v2344_v14 }
  0xfe   :  { %v1833_v16 = vmul.bf16 3216621497, %v2338_v6  ;;  %v1834_v42 = vmul.bf16 3216621497, %v2340_v7  ;;  %v510_v43 = vadd.f32 %v509_v12, %v196_v19  ;;  %v2350_v44 = vpack.c.bf16 %v708_v9, %v700_v10 }
  0xff   :  { %v511_v45 = vpop.f32.mrf.mxu0  ;;  %v562_v46 = vpop.f32.mrf.mxu1  ;;  %v561_v48 = vadd.f32 %v560_v13, %v2286_v20  ;;  %v714_v51 = vadd.f32 %v2330_v53, %v508_v11 }
 0x100   :  { %v721_v17 = vadd.f32 %v2346_v41, %v510_v43  ;;  %v512_v50 = vadd.f32 %v511_v45, %v2288_v21  ;;  %1899 = vpow.bf16 %v1834_v42  ;;  %v563_v52 = vadd.f32 %v562_v46, %v2290_v22 }
 0x101   :  { %v564_v19 = vpop.f32.mrf.mxu1  ;;  %v601_v54 = vpop.f32.mrf.mxu0  ;;  %1901 = vpow.bf16 %v1833_v16  ;;  %v1835_v20 = vmul.bf16 3216621497, %v2350_v44  ;;  %v715_v21 = vadd.f32 %v2330_v53, %v559_v15  ;;  %v716_v62 = vadd.f32 %v2330_v53, %v561_v48 }
 0x102   :  { %v2360_v18 = vpack.c.bf16 %v721_v17, %v713_v47  ;;  %v722_v56 = vadd.f32 %v2346_v41, %v512_v50  ;;  %v565_v57 = vadd.f32 %v564_v19, %v2292_v23  ;;  %v723_v58 = vadd.f32 %v2346_v41, %v563_v52 }
 0x103   :  { %v602_v59 = vadd.f32 %v601_v54, %v2294_v24  ;;  %v603_v22 = vpop.f32.mrf.mxu0  ;;  %v654_v60 = vpop.f32.mrf.mxu1  ;;  %1903 = vpow.bf16 %v1832_v55 }
 0x104   :  { %v1840_v61 = vmul.bf16 3216621497, %v2360_v18  ;;  %v2370_v63 = vpack.c.bf16 %v722_v56, %v714_v51  ;;  %v724_v0 = vadd.f32 %v2346_v41, %v565_v57  ;;  %v2373_v1 = vpack.c.bf16 %v723_v58, %v715_v21 }
 0x105   :  { %v604_v23 = vadd.f32 %v603_v22, %v2296_v25  ;;  %v605_v2 = vpop.f32.mrf.mxu0  ;;  %v656_v4 = vpop.f32.mrf.mxu1  ;;  %v655_v9 = vadd.f32 %v654_v60, %v2298_v26  ;;  %v701_v11 = vadd.f32 %v2324_v39, %v602_v59 }
 0x106   :  { %1905 = vpow.bf16 %v1840_v61  ;;  %v1841_v24 = vmul.bf16 3216621497, %v2370_v63  ;;  %v2377_v8 = vpack.c.bf16 %v724_v0, %v716_v62  ;;  %v1842_v10 = vmul.bf16 3216621497, %v2373_v1 }
 0x107   :  { %1907 = vpow.bf16 %v1835_v20  ;;  %v606_v12 = vadd.f32 %v605_v2, %v2300_v27  ;;  %v607_v13 = vpop.f32.mrf.mxu0  ;;  %v658_v16 = vpop.f32.mrf.mxu1  ;;  %v702_v15 = vadd.f32 %v2324_v39, %v604_v23  ;;  %v657_v45 = vadd.f32 %v656_v4, %v2302_v28 }
 0x108   :  { %1909 = vpow.bf16 %v1841_v24  ;;  %v1843_v25 = vmul.bf16 3216621497, %v2377_v8  ;;  %v608_v42 = vadd.f32 %v607_v13, %v2304_v29  ;;  %v659_v43 = vadd.f32 %v658_v16, %v2306_v30 }
 0x109   :  { %1911 = vpow.bf16 %v1842_v10  ;;  %v709_v26 = vadd.f32 %v2328_v49, %v606_v12  ;;  %v611_v46 = vpop.f32.mrf.mxu0  ;;  %v660_v47 = vpop.f32.mrf.mxu1  ;;  %v703_v27 = vadd.f32 %v2324_v39, %v655_v9  ;;  %v704_v56 = vadd.f32 %v2324_v39, %v657_v45 }
 0x10a   :  { %1913 = vpow.bf16 %v1843_v25  ;;  %v710_v17 = vadd.f32 %v2328_v49, %v608_v42  ;;  %v711_v48 = vadd.f32 %v2328_v49, %v659_v43  ;;  %v612_v29 = vadd.f32 %v611_v46, %v2308_v31 }
 0x10b   :  { %v2392_v50 = vpack.c.bf16 %v709_v26, %v701_v11  ;;  %v661_v30 = vadd.f32 %v660_v47, %v2310_v32  ;;  %v613_v51 = vpop.f32.mrf.mxu0  ;;  %v664_v52 = vpop.f32.mrf.mxu1 }
 0x10c   :  { %v2396_v19 = vpack.c.bf16 %v710_v17, %v702_v15  ;;  %v2398_v28 = vpack.c.bf16 %v711_v48, %v703_v27  ;;  %v614_v54 = vadd.f32 %v613_v51, %v2312_v33  ;;  %v665_v20 = vadd.f32 %v664_v52, %v2314_v34 }
 0x10d   :  { %v1836_v55 = vmul.bf16 3216621497, %v2392_v50  ;;  %v712_v57 = vadd.f32 %v2328_v49, %v661_v30  ;;  %v615_v21 = vpop.f32.mrf.mxu0  ;;  %v666_v31 = vpop.f32.mrf.mxu1  ;;  %v717_v60 = vadd.f32 %v2330_v53, %v612_v29 }
 0x10e   :  { %v1837_v32 = vmul.bf16 3216621497, %v2396_v19  ;;  %v1838_v58 = vmul.bf16 3216621497, %v2398_v28  ;;  %v616_v59 = vadd.f32 %v615_v21, %v2316_v35  ;;  %v1900_v22 = vpop.eup %1899  ;;  %v718_v61 = vadd.f32 %v2330_v53, %v614_v54 }
 0x10f   :  { %v2409_v33 = vpack.c.bf16 %v712_v57, %v704_v56  ;;  %v667_v39 = vadd.f32 %v666_v31, %v2318_v36  ;;  %v617_v49 = vpop.f32.mrf.mxu0  ;;  %v668_v62 = vpop.f32.mrf.mxu1  ;;  %v811_v0 = vadd.bf16 1065369472, %v1900_v22  ;;  %1915 = vpow.bf16 %v1836_v55 }
 0x110   :  { %v1902_v34 = vpop.eup %1901  ;;  %v725_v23 = vadd.f32 %v2346_v41, %v616_v59  ;;  %v618_v2 = vadd.f32 %v617_v49, %v2320_v37  ;;  %1917 = vpow.bf16 %v1837_v32  ;;  %v719_v4 = vadd.f32 %v2330_v53, %v665_v20 }
 0x111   :  { %v1839_v35 = vmul.bf16 3216621497, %v2409_v33  ;;  %v669_v24 = vadd.f32 %v668_v62, %v2322_v38  ;;  %v670_v9 = vpop.f32.mrf.mxu1  ;;  %1919 = vpow.bf16 %v1838_v58  ;;  %v1904_v12 = vpop.eup %1903  ;;  %v720_v13 = vadd.f32 %v2330_v53, %v667_v39 }
 0x112   :  { %v2418_v10 = vpack.c.bf16 %v725_v23, %v717_v60  ;;  %v726_v36 = vadd.f32 %v2346_v41, %v618_v2  ;;  %v671_v11 = vadd.f32 %v670_v9, %v2326_v40  ;;  %1921 = vrcp.bf16 %v811_v0 }
 0x113   :  { %v727_v37 = vadd.f32 %v2346_v41, %v669_v24  ;;  %v810_v16 = vadd.bf16 1065369472, %v1902_v34  ;;  %1923 = vpow.bf16 %v1839_v35  ;;  %v809_v52 = vadd.bf16 1065369472, %v1904_v12 }
 0x114   :  { %v1906_v25 = vpop.eup %1905  ;;  %v1844_v42 = vmul.bf16 3216621497, %v2418_v10  ;;  %v2425_v38 = vpack.c.bf16 %v726_v36, %v718_v61  ;;  %v728_v43 = vadd.f32 %v2346_v41, %v671_v11 }
 0x115   :  { %v1908_v15 = vpop.eup %1907  ;;  %v817_v26 = vadd.bf16 1065369472, %v1906_v25  ;;  %v2428_v45 = vpack.c.bf16 %v727_v37, %v719_v4  ;;  %1925 = vrcp.bf16 %v810_v16 }
 0x116   :  { %v1910_v40 = vpop.eup %1909  ;;  %1927 = vpow.bf16 %v1844_v42  ;;  %v1845_v53 = vmul.bf16 3216621497, %v2425_v38  ;;  %v2431_v46 = vpack.c.bf16 %v728_v43, %v720_v13  ;;  %v812_v51 = vadd.bf16 1065369472, %v1908_v15 }
 0x117   :  { %v1912_v47 = vpop.eup %1911  ;;  %1929 = vrcp.bf16 %v817_v26  ;;  %v1846_v27 = vmul.bf16 3216621497, %v2428_v45  ;;  %v818_v29 = vadd.bf16 1065369472, %v1910_v40 }
 0x118   :  { %v1914_v17 = vpop.eup %1913  ;;  %v819_v48 = vadd.bf16 1065369472, %v1912_v47  ;;  %1931 = vpow.bf16 %v1845_v53  ;;  %v1847_v41 = vmul.bf16 3216621497, %v2431_v46 }
 0x119   :  { %1933 = vpow.bf16 %v1846_v27  ;;  %v820_v30 = vadd.bf16 1065369472, %v1914_v17 }
 0x11a   :  { %1935 = vrcp.bf16 %v819_v48 }
 0x11b   :  { %1937 = vpow.bf16 %v1847_v41 }
 0x11c   :  { %1939 = vrcp.bf16 %v818_v29 }
 0x11d   :  { %1941 = vrcp.bf16 %v820_v30  ;;  %v1916_v54 = vpop.eup %1915  ;;  %v1898_v30 = vld [vmem:[%s2762_s5 + $0x8] sm:$0xff]  }
 0x11e   :  { %1943 = vrcp.bf16 %v812_v51  ;;  %v1918_v55 = vpop.eup %1917  ;;  %v813_v58 = vadd.bf16 1065369472, %v1916_v54 }
 0x11f   :  { %1945 = vrcp.bf16 %v809_v52  ;;  %v1920_v56 = vpop.eup %1919  ;;  %v814_v21 = vadd.bf16 1065369472, %v1918_v55 }
 0x120   :  { %v1922_v57 = vpop.eup %1921  ;;  %v815_v35 = vadd.bf16 1065369472, %v1920_v56 }
 0x121   :  { %v1924_v20 = vpop.eup %1923  ;;  %1947 = vrcp.bf16 %v814_v21  ;;  %v830_v26 = vmul.bf16 1065369472, %v1922_v57 }
 0x122   :  { %v816_v49 = vadd.bf16 1065369472, %v1924_v20 }
 0x123   :  { %v1926_v31 = vpop.eup %1925 }
 0x124   :  { %v1928_v32 = vpop.eup %1927  ;;  %v828_v11 = vmul.bf16 1065369472, %v1926_v31 }
 0x125   :  { %v1930_v59 = vpop.eup %1929  ;;  %v821_v22 = vadd.bf16 1065369472, %v1928_v32 }
 0x126   :  { %v1932_v60 = vpop.eup %1931  ;;  %v842_v2 = vmul.bf16 1065369472, %v1930_v59  ;;  %v858_v53 = vmul.bf16 %v828_v11, %v2338_v6 }
 0x127   :  { %v1934_v61 = vpop.eup %1933  ;;  %1949 = vrcp.bf16 %v821_v22  ;;  %v822_v39 = vadd.bf16 1065369472, %v1932_v60 }
 0x128   :  { %v1936_v62 = vpop.eup %1935  ;;  %1951 = vrcp.bf16 %v813_v58  ;;  %v823_v34 = vadd.bf16 1065369472, %v1934_v61  ;;  %v865_v42 = vmul.bf16 %v842_v2, %v2360_v18  ;;  %v859_v18 = vmul.bf16 %v830_v26, %v2340_v7 }
 0x129   :  { %v1938_v0 = vpop.eup %1937  ;;  %1953 = vrcp.bf16 %v822_v39  ;;  %v846_v9 = vmul.bf16 1065369472, %v1936_v62 }
 0x12a   :  { %v1940_v23 = vpop.eup %1939  ;;  %1955 = vrcp.bf16 %v823_v34  ;;  %v824_v4 = vadd.bf16 1065369472, %v1938_v0 }
 0x12b   :  { %v1942_v24 = vpop.eup %1941  ;;  %v844_v36 = vmul.bf16 1065369472, %v1940_v23  ;;  %1957 = vrcp.bf16 %v816_v49  ;;  %v867_v40 = vmul.bf16 %v846_v9, %v2373_v1 }
 0x12c   :  { %v1944_v12 = vpop.eup %1943  ;;  %v848_v13 = vmul.bf16 1065369472, %v1942_v24  ;;  %1959 = vrcp.bf16 %v824_v4 }
 0x12d   :  { %v1946_v37 = vpop.eup %1945  ;;  %v866_v16 = vmul.bf16 %v844_v36, %v2370_v63  ;;  %v832_v25 = vmul.bf16 1065369472, %v1944_v12  ;;  %1961 = vrcp.bf16 %v815_v35 }
 0x12e   :  { %v868_v43 = vmul.bf16 %v848_v13, %v2377_v8  ;;  %v826_v15 = vmul.bf16 1065369472, %v1946_v37  ;;  %v1897_v8 = vld [vmem:[%s2762_s5] sm:$0xff]  }
 0x12f   :  { %930 = vmatprep.subr.bf16.mxu0 %v866_v16  ;;  %v860_v47 = vmul.bf16 %v832_v25, %v2350_v44  ;;  %v1948_v27 = vpop.eup %1947 }
 0x130   :  { %931 = vmatpush1.bf16.msra.mxu0 %v865_v42  ;;  %983 = vmatprep.subr.bf16.mxu1 %v868_v43  ;;  %v857_v63 = vmul.bf16 %v826_v15, %v2344_v14  ;;  %v836_v14 = vmul.bf16 1065369472, %v1948_v27 }
 0x131   :  { %932 = vmatprep.subr.bf16.mxu0 %v858_v53  ;;  %984 = vmatpush1.bf16.msra.mxu1 %v867_v40 }
 0x132   :  { %985 = vmatprep.subr.bf16.mxu1 %v860_v47  ;;  %v862_v20 = vmul.bf16 %v836_v14, %v2396_v19 }
 0x134   :  { %933 = vmatpush1.bf16.msra.mxu0 %v857_v63 }
 0x135   :  { %v1950_v1 = vpop.eup %1949  ;;  %986 = vmatpush1.bf16.msra.mxu1 %v859_v18 }
 0x136   :  { %v1952_v6 = vpop.eup %1951  ;;  %v850_v48 = vmul.bf16 1065369472, %v1950_v1 }
 0x137   :  { %v1954_v17 = vpop.eup %1953  ;;  %1850 = vmatmul.mubr.msk.bf16.vlgmr.msra.gmra.mxu0 %vm911_vm3, %v1897_v8  ;;  %v834_v52 = vmul.bf16 1065369472, %v1952_v6 }
 0x138   :  { %v1956_v44 = vpop.eup %1955  ;;  %1852 = vmatmul.mubr.msk.bf16.vlgmr.msra.gmra.mxu1 %vm911_vm3, %v1897_v8  ;;  %960 = vmatprep.mubr.bf16.mxu0 %v2098_v3  ;;  %v852_v7 = vmul.bf16 1065369472, %v1954_v17  ;;  %v869_v54 = vmul.bf16 %v850_v48, %v2418_v10 }
 0x139   :  { %v1958_v41 = vpop.eup %1957  ;;  %1013 = vmatprep.mubr.bf16.mxu1 %v2098_v3  ;;  %v854_v55 = vmul.bf16 1065369472, %v1956_v44  ;;  %v861_v32 = vmul.bf16 %v834_v52, %v2392_v50  ;;  %v2473_v50 = vpop.permute.xlu0 %893 }
 0x13a   :  { %v1960_v29 = vpop.eup %1959  ;;  %v870_v51 = vmul.bf16 %v852_v7, %v2425_v38  ;;  %v840_v21 = vmul.bf16 1065369472, %v1958_v41 }
 0x13b   :  { %v856_v56 = vmul.bf16 1065369472, %v1960_v29  ;;  %v1962_v57 = vpop.eup %1961  ;;  %v871_v59 = vmul.bf16 %v854_v55, %v2428_v45 }
 0x13c   :  { %1036 = vmatprep.subr.bf16.mxu0 %v870_v51  ;;  %v838_v58 = vmul.bf16 1065369472, %v1962_v57  ;;  %v864_v10 = vmul.bf16 %v840_v21, %v2409_v33 }
 0x13d   :  { %1037 = vmatpush1.bf16.msra.mxu0 %v869_v54  ;;  %v872_v31 = vmul.bf16 %v856_v56, %v2431_v46  ;;  %v2477_v46 = vpop.permute.xlu0 %883 }
 0x13e   :  { %1038 = vmatprep.subr.bf16.mxu0 %v862_v20  ;;  %v863_v19 = vmul.bf16 %v838_v58, %v2398_v28  ;;  %v2475_v28 = vpop.permute.xlu1 %898 }
 0x13f   :  { %1851 = vmatmul.mubr.msk.bf16.gmra.mxu0 %vm911_vm3, %v1898_v30  ;;  %1089 = vmatprep.subr.bf16.mxu1 %v872_v31 }
 0x140   :  { %1853 = vmatmul.mubr.msk.bf16.gmra.mxu1 %vm911_vm3, %v1898_v30  ;;  %1056 = vmatprep.mubr.bf16.mxu0 %v2098_v3 }
 0x141   :  { %1090 = vmatpush1.bf16.msra.mxu1 %v871_v59  ;;  %1039 = vmatpush1.bf16.msra.mxu0 %v861_v32 }
 0x142   :  { %1091 = vmatprep.subr.bf16.mxu1 %v864_v10  ;;  %1109 = vmatprep.mubr.bf16.mxu1 %v2098_v3  ;;  %v2479_v60 = vpop.permute.xlu1 %888 }
 0x145   :  { %1092 = vmatpush1.bf16.msra.mxu1 %v863_v19 }
 0x147   :  { %1854 = vmatmul.mubr.msk.bf16.vlgmr.msra.gmra.mxu0 %vm911_vm3, %v1897_v8 }
 0x148   :  { %1856 = vmatmul.mubr.msk.bf16.vlgmr.msra.gmra.mxu1 %vm911_vm3, %v1897_v8  ;;  %1066 = vmatprep.mubr.bf16.mxu0 %v2098_v3 }
 0x149   :  { %1119 = vmatprep.mubr.bf16.mxu1 %v2098_v3 }
 0x14f   :  { %1855 = vmatmul.mubr.msk.bf16.gmra.mxu0 %vm911_vm3, %v1898_v30 }
 0x150   :  { %1857 = vmatmul.mubr.msk.bf16.gmra.mxu1 %vm911_vm3, %v1898_v30  ;;  %1316 = vmatprep.mubr.bf16.mxu0 %v2098_v3 }
 0x151   :  { %1357 = vmatprep.mubr.bf16.mxu1 %v2098_v3 }
 0x1f7   :  { %v952_v33 = vpop.f32.mrf.mxu0 }
 0x1f8   :  { %v1005_v38 = vpop.f32.mrf.mxu1  ;;  %v953_v39 = vadd.f32 %v952_v33, %v2477_v46 }
 0x1f9   :  { %v954_v45 = vpop.f32.mrf.mxu0  ;;  %v1006_v34 = vadd.f32 %v1005_v38, %v2477_v46 }
 0x1fa   :  { %v1007_v22 = vpop.f32.mrf.mxu1  ;;  %v955_v2 = vadd.f32 %v954_v45, %v2477_v46 }
 0x1fb   :  { %v956_v61 = vpop.f32.mrf.mxu0  ;;  %v1008_v9 = vadd.f32 %v1007_v22, %v2477_v46 }
 0x1fc   :  { %v957_v49 = vadd.f32 %v956_v61, %v2479_v60  ;;  %v1009_v62 = vpop.f32.mrf.mxu1 }
 0x1fd   :  { %v958_v0 = vpop.f32.mrf.mxu0  ;;  %v1010_v23 = vadd.f32 %v1009_v62, %v2479_v60 }
 0x1fe   :  { %v2486_v35 = vpack.c.bf16 %v957_v49, %v953_v39  ;;  %v959_v4 = vadd.f32 %v958_v0, %v2479_v60  ;;  %v1011_v24 = vpop.f32.mrf.mxu1 }
 0x1ff   :  { %v2490_v36 = vpack.c.bf16 %v1010_v23, %v1006_v34  ;;  %v962_v11 = vpop.f32.mrf.mxu0  ;;  %v1012_v12 = vadd.f32 %v1011_v24, %v2479_v60 }
 0x200   :  { %v1858_v13 = vmul.bf16 3216621497, %v2486_v35  ;;  %v2494_v37 = vpack.c.bf16 %v959_v4, %v955_v2  ;;  %v1015_v16 = vpop.f32.mrf.mxu1  ;;  %v963_v47 = vadd.f32 %v962_v11, %v2473_v50 }
 0x201   :  { %v1860_v25 = vmul.bf16 3216621497, %v2490_v36  ;;  %v2497_v42 = vpack.c.bf16 %v1012_v12, %v1008_v9  ;;  %v964_v43 = vpop.f32.mrf.mxu0  ;;  %v1016_v8 = vadd.f32 %v1015_v16, %v2473_v50 }
 0x202   :  { %1963 = vpow.bf16 %v1858_v13  ;;  %v1859_v15 = vmul.bf16 3216621497, %v2494_v37  ;;  %v1017_v26 = vpop.f32.mrf.mxu1  ;;  %v965_v6 = vadd.f32 %v964_v43, %v2473_v50 }
 0x203   :  { %1965 = vpow.bf16 %v1860_v25  ;;  %v1861_v40 = vmul.bf16 3216621497, %v2497_v42  ;;  %v966_v53 = vpop.f32.mrf.mxu0  ;;  %v1018_v7 = vadd.f32 %v1017_v26, %v2473_v50 }
 0x204   :  { %1967 = vpow.bf16 %v1859_v15  ;;  %v967_v63 = vadd.f32 %v966_v53, %v2475_v28  ;;  %v1019_v18 = vpop.f32.mrf.mxu1 }
 0x205   :  { %1969 = vpow.bf16 %v1861_v40  ;;  %v968_v27 = vpop.f32.mrf.mxu0  ;;  %v1020_v1 = vadd.f32 %v1019_v18, %v2475_v28 }
 0x206   :  { %v2506_v17 = vpack.c.bf16 %v967_v63, %v963_v47  ;;  %v969_v48 = vadd.f32 %v968_v27, %v2475_v28  ;;  %v1021_v44 = vpop.f32.mrf.mxu1 }
 0x207   :  { %v2510_v14 = vpack.c.bf16 %v1020_v1, %v1016_v8  ;;  %v1022_v41 = vadd.f32 %v1021_v44, %v2475_v28  ;;  %v1058_v29 = vpop.f32.mrf.mxu0 }
 0x208   :  { %v1866_v30 = vmul.bf16 3216621497, %v2506_v17  ;;  %v2514_v51 = vpack.c.bf16 %v969_v48, %v965_v6  ;;  %v1111_v52 = vpop.f32.mrf.mxu1  ;;  %v1059_v32 = vadd.f32 %v1058_v29, %v2477_v46 }
 0x209   :  { %v1868_v54 = vmul.bf16 3216621497, %v2510_v14  ;;  %v2517_v55 = vpack.c.bf16 %v1022_v41, %v1018_v7  ;;  %v1060_v56 = vpop.f32.mrf.mxu0  ;;  %v1112_v38 = vadd.f32 %v1111_v52, %v2477_v46 }
 0x20a   :  { %1971 = vpow.bf16 %v1866_v30  ;;  %v1867_v57 = vmul.bf16 3216621497, %v2514_v51  ;;  %v1113_v20 = vpop.f32.mrf.mxu1  ;;  %v1061_v33 = vadd.f32 %v1060_v56, %v2477_v46 }
 0x20b   :  { %1973 = vpow.bf16 %v1868_v54  ;;  %v1869_v21 = vmul.bf16 3216621497, %v2517_v55  ;;  %v1062_v31 = vpop.f32.mrf.mxu0  ;;  %v1114_v39 = vadd.f32 %v1113_v20, %v2477_v46 }
 0x20c   :  { %1975 = vpow.bf16 %v1867_v57  ;;  %v1063_v58 = vadd.f32 %v1062_v31, %v2479_v60  ;;  %v1115_v59 = vpop.f32.mrf.mxu1 }
 0x20d   :  { %1977 = vpow.bf16 %v1869_v21  ;;  %v1064_v10 = vpop.f32.mrf.mxu0  ;;  %v1116_v19 = vadd.f32 %v1115_v59, %v2479_v60 }
 0x20e   :  { %v2526_v45 = vpack.c.bf16 %v1063_v58, %v1059_v32  ;;  %v1065_v22 = vadd.f32 %v1064_v10, %v2479_v60  ;;  %v1117_v61 = vpop.f32.mrf.mxu1 }
 0x20f   :  { %v1068_v49 = vpop.f32.mrf.mxu0  ;;  %v1118_v62 = vadd.f32 %v1117_v61, %v2479_v60  ;;  %v2534_v2 = vpack.c.bf16 %v1116_v19, %v1112_v38 }
 0x210   :  { %v1964_v34 = vpop.eup %1963  ;;  %v1862_v0 = vmul.bf16 3216621497, %v2526_v45  ;;  %v2532_v23 = vpack.c.bf16 %v1065_v22, %v1061_v33  ;;  %v1121_v4 = vpop.f32.mrf.mxu1  ;;  %v1069_v15 = vadd.f32 %v1068_v49, %v2473_v50 }
 0x211   :  { %v1966_v24 = vpop.eup %1965  ;;  %v1210_v9 = vadd.bf16 1065369472, %v1964_v34  ;;  %v2536_v11 = vpack.c.bf16 %v1118_v62, %v1114_v39  ;;  %v1070_v12 = vpop.f32.mrf.mxu0  ;;  %v1864_v53 = vmul.bf16 3216621497, %v2534_v2  ;;  %v1122_v8 = vadd.f32 %v1121_v4, %v2473_v50 }
 0x212   :  { %v1968_v13 = vpop.eup %1967  ;;  %v1212_v16 = vadd.bf16 1065369472, %v1966_v24  ;;  %1979 = vpow.bf16 %v1862_v0  ;;  %v1123_v46 = vpop.f32.mrf.mxu1  ;;  %v1863_v43 = vmul.bf16 3216621497, %v2532_v23  ;;  %v1071_v6 = vadd.f32 %v1070_v12, %v2473_v50 }
 0x213   :  { %v1970_v25 = vpop.eup %1969  ;;  %1981 = vrcp.bf16 %v1210_v9  ;;  %v1211_v60 = vadd.bf16 1065369472, %v1968_v13  ;;  %v1072_v26 = vpop.f32.mrf.mxu0  ;;  %v1865_v18 = vmul.bf16 3216621497, %v2536_v11  ;;  %v1124_v41 = vadd.f32 %v1123_v46, %v2473_v50 }
 0x214   :  { %1983 = vrcp.bf16 %v1212_v16  ;;  %v1213_v40 = vadd.bf16 1065369472, %v1970_v25  ;;  %v1073_v47 = vadd.f32 %v1072_v26, %v2475_v28  ;;  %v1125_v63 = vpop.f32.mrf.mxu1 }
 0x215   :  { %1985 = vrcp.bf16 %v1211_v60  ;;  %v1074_v27 = vpop.f32.mrf.mxu0  ;;  %v1126_v1 = vadd.f32 %v1125_v63, %v2475_v28 }
 0x216   :  { %1987 = vrcp.bf16 %v1213_v40  ;;  %v2546_v48 = vpack.c.bf16 %v1073_v47, %v1069_v15  ;;  %v1075_v44 = vadd.f32 %v1074_v27, %v2475_v28  ;;  %v1127_v7 = vpop.f32.mrf.mxu1 }
 0x217   :  { %1989 = vpow.bf16 %v1863_v43  ;;  %v1128_v29 = vadd.f32 %v1127_v7, %v2475_v28  ;;  %v2554_v56 = vpack.c.bf16 %v1126_v1, %v1122_v8 }
 0x218   :  { %v1972_v30 = vpop.eup %1971  ;;  %1991 = vpow.bf16 %v1864_v53  ;;  %v1870_v52 = vmul.bf16 3216621497, %v2546_v48  ;;  %v2552_v54 = vpack.c.bf16 %v1075_v44, %v1071_v6 }
 0x219   :  { %v1974_v57 = vpop.eup %1973  ;;  %v1218_v20 = vadd.bf16 1065369472, %v1972_v30  ;;  %1993 = vpow.bf16 %v1865_v18  ;;  %v2556_v21 = vpack.c.bf16 %v1128_v29, %v1124_v41  ;;  %v1872_v10 = vmul.bf16 3216621497, %v2554_v56 }
 0x21a   :  { %v1976_v31 = vpop.eup %1975  ;;  %v1220_v32 = vadd.bf16 1065369472, %v1974_v57  ;;  %1995 = vpow.bf16 %v1870_v52  ;;  %v1871_v28 = vmul.bf16 3216621497, %v2552_v54 }
 0x21b   :  { %v1978_v58 = vpop.eup %1977  ;;  %1997 = vrcp.bf16 %v1218_v20  ;;  %v1219_v50 = vadd.bf16 1065369472, %v1976_v31  ;;  %v1873_v19 = vmul.bf16 3216621497, %v2556_v21 }
 0x21c   :  { %1999 = vrcp.bf16 %v1220_v32  ;;  %v1221_v59 = vadd.bf16 1065369472, %v1978_v58 }
 0x21d   :  { %2001 = vrcp.bf16 %v1219_v50 }
 0x21e   :  { %2003 = vrcp.bf16 %v1221_v59 }
 0x21f   :  { %2005 = vpow.bf16 %v1871_v28 }
 0x220   :  { %v1980_v33 = vpop.eup %1979  ;;  %2007 = vpow.bf16 %v1872_v10 }
 0x221   :  { %v1982_v38 = vpop.eup %1981  ;;  %2009 = vpow.bf16 %v1873_v19  ;;  %v1214_v4 = vadd.bf16 1065369472, %v1980_v33 }
 0x222   :  { %v1984_v22 = vpop.eup %1983  ;;  %v1227_v46 = vmul.bf16 1065369472, %v1982_v38 }
 0x223   :  { %v1986_v61 = vpop.eup %1985  ;;  %2011 = vrcp.bf16 %v1214_v4  ;;  %v1231_v47 = vmul.bf16 1065369472, %v1984_v22 }
 0x224   :  { %v1988_v39 = vpop.eup %1987  ;;  %v1229_v40 = vmul.bf16 1065369472, %v1986_v61 }
 0x225   :  { %v1990_v49 = vpop.eup %1989  ;;  %v1233_v18 = vmul.bf16 1065369472, %v1988_v39 }
 0x226   :  { %v1992_v62 = vpop.eup %1991  ;;  %v1215_v13 = vadd.bf16 1065369472, %v1990_v49  ;;  %v1259_v57 = vmul.bf16 %v1229_v40, %v2494_v37 }
 0x227   :  { %v1994_v34 = vpop.eup %1993  ;;  %v1216_v27 = vadd.bf16 1065369472, %v1992_v62  ;;  %v1261_v20 = vmul.bf16 %v1233_v18, %v2497_v42 }
 0x228   :  { %v1996_v0 = vpop.eup %1995  ;;  %v1217_v60 = vadd.bf16 1065369472, %v1994_v34 }
 0x229   :  { %v1998_v24 = vpop.eup %1997  ;;  %v1222_v9 = vadd.bf16 1065369472, %v1996_v0 }
 0x22a   :  { %v2000_v12 = vpop.eup %1999  ;;  %v1243_v25 = vmul.bf16 1065369472, %v1998_v24 }
 0x22b   :  { %v2002_v16 = vpop.eup %2001  ;;  %v1247_v15 = vmul.bf16 1065369472, %v2000_v12  ;;  %2013 = vrcp.bf16 %v1222_v9 }
 0x22c   :  { %v2004_v43 = vpop.eup %2003  ;;  %v1245_v26 = vmul.bf16 1065369472, %v2002_v16  ;;  %2015 = vrcp.bf16 %v1215_v13  ;;  %v1266_v7 = vmul.bf16 %v1243_v25, %v2506_v17  ;;  %v1258_v17 = vmul.bf16 %v1227_v46, %v2486_v35 }
 0x22d   :  { %v2006_v53 = vpop.eup %2005  ;;  %v1249_v63 = vmul.bf16 1065369472, %v2004_v43  ;;  %2017 = vrcp.bf16 %v1217_v60  ;;  %v1268_v30 = vmul.bf16 %v1247_v15, %v2510_v14  ;;  %v1274_v14 = vld [vmem:[%s2764_s7] sm:$0xf]  ;;  %s2100_s7 = smov [#allocation2]  }
 0x22e   :  { %v2008_v8 = vpop.eup %2007  ;;  %v1223_v1 = vadd.bf16 1065369472, %v2006_v53  ;;  %v1267_v6 = vmul.bf16 %v1245_v26, %v2514_v51  ;;  %v1260_v51 = vmul.bf16 %v1231_v47, %v2490_v36  ;;  %s1780_s13 = sshll.u32 %s2100_s7, 4  ;;  %s1781_s13 = int_to_ptr.vmem [resolvable:$true] %s1780_s13 }
 0x22f   :  { %v2010_v44 = vpop.eup %2009  ;;  %v1224_v41 = vadd.bf16 1065369472, %v2008_v8  ;;  %v1269_v29 = vmul.bf16 %v1249_v63, %v2517_v55  ;;  %s2075_s6 = scalar_lea.vmem %s1781_s13, 256  ;;  %p2080_p1 = scmp.lt.s32.totalorder %s1781_s13, %s1781_s13 }
 0x230   :  { %2019 = vrcp.bf16 %v1223_v1  ;;  %v1225_v52 = vadd.bf16 1065369472, %v2010_v44  ;;  %1296 = vmatprep.subr.bf16.mxu0 %v1267_v6  ;;  %p2076_p0 = scmp.ne.s32.totalorder %s1781_s13, %s2075_s6  ;;  %p2081_p2 = scmp.lt.s32.totalorder %s2075_s6, %s2075_s6 }
 0x231   :  { %2021 = vrcp.bf16 %v1224_v41  ;;  %1297 = vmatpush1.bf16.msra.mxu0 %v1266_v7  ;;  %1337 = vmatprep.subr.bf16.mxu1 %v1269_v29  ;;  %v2012_v37 = vpop.eup %2011 }
 0x232   :  { %2023 = vrcp.bf16 %v1225_v52  ;;  %1298 = vmatprep.subr.bf16.mxu0 %v1259_v57  ;;  %1338 = vmatpush1.bf16.msra.mxu1 %v1268_v30  ;;  %v1235_v22 = vmul.bf16 1065369472, %v2012_v37  ;;  %p2082_p3 = por %p2081_p2, %p2080_p1 }
 0x233   :  { %2025 = vrcp.bf16 %v1216_v27  ;;  %1339 = vmatprep.subr.bf16.mxu1 %v1261_v20 }
 0x234   :  { %p2083_p4 = pnand %p2082_p3, %p2076_p0 }
 0x235   :  { %1299 = vmatpush1.bf16.msra.mxu0 %v1258_v17 }
 0x236   :  { %1340 = vmatpush1.bf16.msra.mxu1 %v1260_v51 }
 0x238   :  { %1874 = vmatmul.mubr.msk.bf16.vlgmr.msra.gmra.mxu0 %vm911_vm3, %v1274_v14 }
 0x239   :  { %1875 = vmatmul.mubr.msk.bf16.vlgmr.msra.gmra.mxu1 %vm911_vm3, %v1274_v14  ;;  %1398 = vmatprep.mubr.bf16.mxu0 %v2098_v3  ;;  %v2014_v35 = vpop.eup %2013 }
 0x23a   :  { %1439 = vmatprep.mubr.bf16.mxu1 %v2098_v3  ;;  %v2016_v42 = vpop.eup %2015  ;;  %v1251_v36 = vmul.bf16 1065369472, %v2014_v35 }
 0x23b   :  { %v2018_v55 = vpop.eup %2017  ;;  %v1237_v50 = vmul.bf16 1065369472, %v2016_v42 }
 0x23c   :  { %v1241_v38 = vmul.bf16 1065369472, %v2018_v55  ;;  %v1270_v61 = vmul.bf16 %v1251_v36, %v2546_v48 }
 0x23d   :  { %v1263_v3 = vmul.bf16 %v1237_v50, %v2532_v23  ;;  %v1279_v23 = vpop.permute.xlu0 %1278 }
 0x23e   :  { %v2020_v31 = vpop.eup %2019  ;;  %v1265_v34 = vmul.bf16 %v1241_v38, %v2536_v11 }
 0x23f   :  { %v2022_v32 = vpop.eup %2021  ;;  %v1253_v58 = vmul.bf16 1065369472, %v2020_v31 }
 0x240   :  { %v2024_v28 = vpop.eup %2023  ;;  %v1255_v59 = vmul.bf16 1065369472, %v2022_v32 }
 0x241   :  { %v2026_v10 = vpop.eup %2025  ;;  %v1271_v19 = vmul.bf16 %v1253_v58, %v2552_v54  ;;  %v1257_v33 = vmul.bf16 1065369472, %v2024_v28  ;;  %v1262_v54 = vmul.bf16 %v1235_v22, %v2526_v45 }
 0x242   :  { %v1239_v49 = vmul.bf16 1065369472, %v2026_v10  ;;  %v1272_v62 = vmul.bf16 %v1255_v59, %v2554_v56 }
 0x243   :  { %1378 = vmatprep.subr.bf16.mxu0 %v1271_v19  ;;  %v1273_v39 = vmul.bf16 %v1257_v33, %v2556_v21 }
 0x244   :  { %1379 = vmatpush1.bf16.msra.mxu0 %v1270_v61  ;;  %v1264_v0 = vmul.bf16 %v1239_v49, %v2534_v2 }
 0x245   :  { %1380 = vmatprep.subr.bf16.mxu0 %v1263_v3  ;;  %1419 = vmatprep.subr.bf16.mxu1 %v1273_v39 }
 0x246   :  { %1420 = vmatpush1.bf16.msra.mxu1 %v1272_v62 }
 0x247   :  { %1421 = vmatprep.subr.bf16.mxu1 %v1265_v34 }
 0x248   :  { %1381 = vmatpush1.bf16.msra.mxu0 %v1262_v54 }
 0x24a   :  { %1422 = vmatpush1.bf16.msra.mxu1 %v1264_v0 }
 0x24b   :  { %1876 = vmatmul.mubr.msk.bf16.vlgmr.msra.gmra.mxu0 %vm911_vm3, %v1274_v14 }
 0x24d   :  { %1877 = vmatmul.mubr.msk.bf16.vlgmr.msra.gmra.mxu1 %vm911_vm3, %v1274_v14 }
 0x2f8   :  { %v1318_v48 = vpop.f32.mrf.mxu0 }
 0x2f9   :  { %v2586_v56 = vadd.f32 %v1318_v48, %v1279_v23  ;;  %v1359_v21 = vpop.f32.mrf.mxu1 }
 0x2fa   :  { %v1320_v4 = vpop.f32.mrf.mxu0  ;;  %v2588_v24 = vadd.f32 %v1359_v21, %v1279_v23 }
 0x2fb   :  { %v1472_v45 = vand.u32 2147483647, %v2586_v56  ;;  %v1361_v11 = vpop.f32.mrf.mxu1  ;;  %v2591_v9 = vadd.f32 %v1320_v4, %v1279_v23  ;;  %v1592_v50 = vmul.f32 %v2586_v56, %v2586_v56  ;;  %v1448_v33 = vmax.f32 %v2586_v56, 0.0 }
 0x2fc   :  { %v1474_v2 = vand.u32 2147483647, %v2588_v24  ;;  %v1322_v12 = vpop.f32.mrf.mxu0  ;;  %v2594_v16 = vadd.f32 %v1361_v11, %v1279_v23  ;;  %v1450_v38 = vmax.f32 %v2588_v24, 0.0  ;;  %v2622_v39 = vmul.f32 %v2588_v24, %v2588_v24 }
 0x2fd   :  { %v1480_v13 = vsub.f32 0.0, %v1472_v45  ;;  %v1363_v46 = vpop.f32.mrf.mxu1  ;;  %v1473_v25 = vand.u32 2147483647, %v2591_v9  ;;  %v1608_v61 = vrot.slane %v1592_v50, 1  ;;  %vm1456_vm4 = vcmp.ne.f32.partialorder %v2586_v56, %v2586_v56 }
 0x2fe   :  { %v1323_v60 = vpop.f32.mrf.mxu0  ;;  %v1482_v15 = vsub.f32 0.0, %v1474_v2  ;;  %v1475_v47 = vand.u32 2147483647, %v2594_v16  ;;  %v1593_v45 = vmul.f32 %v2591_v9, %v2591_v9  ;;  %vm1458_vm5 = vcmp.ne.f32.partialorder %v2588_v24, %v2588_v24 }
 0x2ff   :  { %v1488_v43 = vmul.f32 1.442695, %v1480_v13  ;;  %v1364_v26 = vpop.f32.mrf.mxu1  ;;  %v1481_v40 = vsub.f32 0.0, %v1473_v25  ;;  %v1624_v46 = vadd.f32 %v1608_v61, %v1592_v50  ;;  %vm1457_vm6 = vcmp.ne.f32.partialorder %v2591_v9, %v2591_v9 }
 0x300   :  { %v1492_v53 = vmul.f32 1.442695, %v1482_v15  ;;  %v1483_v18 = vsub.f32 0.0, %v1475_v47  ;;  %vm1459_vm11 = vcmp.ne.f32.partialorder %v2594_v16, %v2594_v16 }
 0x301   :  { %2027 = vpow2.f32 %v1488_v43  ;;  %v1490_v63 = vmul.f32 1.442695, %v1481_v40 }
 0x302   :  { %2029 = vpow2.f32 %v1492_v53  ;;  %v1494_v8 = vmul.f32 1.442695, %v1483_v18 }
 0x303   :  { %2031 = vpow2.f32 %v1490_v63  ;;  %v1610_v63 = vrot.slane %v2622_v39, 1 }
 0x304   :  { %2033 = vpow2.f32 %v1494_v8 }
 0x30b   :  { %v1400_v27 = vpop.f32.mrf.mxu0 }
 0x30c   :  { %v2598_v1 = vadd.f32 %v1400_v27, %v1279_v23 }
 0x30d   :  { %v1402_v6 = vpop.f32.mrf.mxu0  ;;  %v1441_v44 = vpop.f32.mrf.mxu1 }
 0x30e   :  { %v2028_v7 = vpop.eup %2027  ;;  %v1476_v41 = vand.u32 2147483647, %v2598_v1  ;;  %v2606_v36 = vadd.f32 %v1402_v6, %v1279_v23  ;;  %v2609_v58 = vadd.f32 %v1441_v44, %v1279_v23  ;;  %vm1460_vm13 = vcmp.ne.f32.partialorder %v2598_v1, %v2598_v1 }
 0x30f   :  { %v1504_v29 = vadd.f32 1.0, %v2028_v7  ;;  %v1443_v30 = vpop.f32.mrf.mxu1  ;;  %v1404_v52 = vpop.f32.mrf.mxu0  ;;  %v1507_v28 = vmul.f32 -0.5, %v2028_v7  ;;  %v1510_v34 = vand.u32 2147483647, %v2028_v7 }
 0x310   :  { %v2030_v57 = vpop.eup %2029  ;;  %v1484_v20 = vsub.f32 0.0, %v1476_v41  ;;  %v2613_v59 = vadd.f32 %v1443_v30, %v1279_v23  ;;  %v1477_v19 = vand.u32 2147483647, %v2606_v36  ;;  %v1478_v22 = vand.u32 2147483647, %v2609_v58 }
 0x311   :  { %v2601_v17 = vpop.eup %2031  ;;  %2035 = vlog2.f32 %v1504_v29  ;;  %v1522_v51 = vadd.f32 1.0, %v2030_v57  ;;  %v1445_v14 = vpop.f32.mrf.mxu1  ;;  %v1525_v10 = vmul.f32 -0.5, %v2030_v57  ;;  %v1508_v62 = vadd.f32 1.0, %v1507_v28 }
 0x312   :  { %v1405_v37 = vpop.f32.mrf.mxu0  ;;  %v1513_v35 = vadd.f32 1.0, %v2601_v17  ;;  %v1496_v42 = vmul.f32 1.442695, %v1484_v20  ;;  %v2604_v31 = vpop.eup %2033  ;;  %v1516_v3 = vmul.f32 -0.5, %v2601_v17  ;;  %v1485_v49 = vsub.f32 0.0, %v1477_v19 }
 0x313   :  { %2037 = vlog2.f32 %v1522_v51  ;;  %v1446_v55 = vpop.f32.mrf.mxu1  ;;  %v1531_v32 = vadd.f32 1.0, %v2604_v31  ;;  %v1486_v54 = vsub.f32 0.0, %v1478_v22  ;;  %v1479_v0 = vand.u32 2147483647, %v2613_v59 }
 0x314   :  { %2039 = vlog2.f32 %v1513_v35  ;;  %v1449_v23 = vmax.f32 %v2591_v9, 0.0  ;;  %v1526_v48 = vadd.f32 1.0, %v1525_v10  ;;  %v1528_v21 = vand.u32 2147483647, %v2030_v57 }
 0x315   :  { %2041 = vpow2.f32 %v1496_v42  ;;  %v1498_v4 = vmul.f32 1.442695, %v1485_v49  ;;  %v1534_v11 = vmul.f32 -0.5, %v2604_v31  ;;  %v1500_v2 = vmul.f32 1.442695, %v1486_v54 }
 0x316   :  { %2043 = vlog2.f32 %v1531_v32  ;;  %v1487_v12 = vsub.f32 0.0, %v1479_v0  ;;  %v1517_v25 = vadd.f32 1.0, %v1516_v3  ;;  %v1519_v60 = vand.u32 2147483647, %v2601_v17 }
 0x317   :  { %2045 = vpow2.f32 %v1498_v4  ;;  %v1509_v15 = vmul.f32 %v2028_v7, %v1508_v62  ;;  %vm1511_vm7 = vcmp.lt.f32.partialorder %v1510_v34, 0.0004427343  ;;  %v1527_v53 = vmul.f32 %v2030_v57, %v1526_v48 }
 0x318   :  { %2047 = vpow2.f32 %v1500_v2  ;;  %v1502_v26 = vmul.f32 1.442695, %v1487_v12  ;;  %vm2636_vm8 = vcmp.lt.f32.partialorder %v1528_v21, 0.0004427343  ;;  %v1535_v6 = vadd.f32 1.0, %v1534_v11 }
 0x319   :  { %v1518_v7 = vmul.f32 %v2601_v17, %v1517_v25  ;;  %v1537_v29 = vand.u32 2147483647, %v2604_v31  ;;  %vm1520_vm9 = vcmp.lt.f32.partialorder %v1519_v60, 0.0004427343  ;;  %v1609_v52 = vrot.slane %v1593_v45, 1 }
 0x31a   :  { %2049 = vpow2.f32 %v1502_v26  ;;  %v1595_v20 = vmul.f32 %v2594_v16, %v2594_v16  ;;  %v1536_v50 = vmul.f32 %v2604_v31, %v1535_v6  ;;  %v1451_v10 = vmax.f32 %v2594_v16, 0.0 }
 0x31b   :  { %vm1538_vm10 = vcmp.lt.f32.partialorder %v1537_v29, 0.0004427343  ;;  %v1626_v62 = vadd.f32 %v1610_v63, %v2622_v39  ;;  %v1625_v54 = vadd.f32 %v1609_v52, %v1593_v45  ;;  %v1596_v63 = vmul.f32 %v2598_v1, %v2598_v1 }
 0x31c   :  { %v1611_v31 = vrot.slane %v1595_v20, 1  ;;  %vm1461_vm14 = vcmp.ne.f32.partialorder %v2606_v36, %v2606_v36  ;;  %vm1462_vm15 = vcmp.ne.f32.partialorder %v2609_v58, %v2609_v58  ;;  %vm1463_vm0 = vcmp.ne.f32.partialorder %v2613_v59, %v2613_v59 }
 0x31d   :  { %v1612_v29 = vrot.slane %v1596_v63, 1 }
 0x31e   :  { %v2036_v13 = vpop.eup %2035 }
 0x31f   :  { %v1506_v43 = vmul.f32 0.6931472, %v2036_v13  ;;  %v1627_v13 = vadd.f32 %v1611_v31, %v1595_v20  ;;  %v2685_v20 = vsub.s32 0, %v2156_v5  ;;  %v1455_v31 = vmax.f32 %v2613_v59, 0.0 }
 0x320   :  { %v2038_v40 = vpop.eup %2037 }
 0x321   :  { %v2040_v18 = vpop.eup %2039  ;;  %v1512_v8 = vsel %vm1511_vm7, %v1509_v15, %v1506_v43  ;;  %v1524_v27 = vmul.f32 0.6931472, %v2038_v40  ;;  %v2099_v40 = vmov 1983009808  }
 0x322   :  { %v1576_v44 = vadd.f32 %v1512_v8, %v1448_v33  ;;  %v1515_v41 = vmul.f32 0.6931472, %v2040_v18  ;;  %v2643_v30 = vpop.eup %2041 }
 0x323   :  { %v1530_v57 = vsel %vm2636_vm8, %v1527_v53, %v1524_v27  ;;  %v2044_v51 = vpop.eup %2043  ;;  %v1540_v35 = vadd.f32 1.0, %v2643_v30  ;;  %v1739_v53 = vunpack.c.l.s4 %v2099_v40  ;;  %v1546_v27 = vand.u32 2147483647, %v2643_v30 }
 0x324   :  { %v1584_v14 = vsel %vm1456_vm4, %v2586_v56, %v1576_v44  ;;  %v1521_v37 = vsel %vm1520_vm9, %v1518_v7, %v1515_v41  ;;  %v1578_v17 = vadd.f32 %v1530_v57, %v1450_v38  ;;  %v1533_v32 = vmul.f32 0.6931472, %v2044_v51  ;;  %v2668_v48 = vpop.eup %2045 }
 0x325   :  { %v1632_v42 = vmul.f32 %v1584_v14, %v1584_v14  ;;  %v1577_v55 = vadd.f32 %v1521_v37, %v1449_v23  ;;  %2051 = vlog2.f32 %v1540_v35  ;;  %v2670_v2 = vpop.eup %2047  ;;  %v1549_v39 = vadd.f32 1.0, %v2668_v48 }
 0x326   :  { %v1586_v28 = vsel %vm1458_vm5, %v2588_v24, %v1578_v17  ;;  %v1539_v22 = vsel %vm1538_vm10, %v1536_v50, %v1533_v32  ;;  %v1558_v45 = vadd.f32 1.0, %v2670_v2  ;;  %v1740_v44 = vunpack.c.0.s8 %v1739_v53 }
 0x327   :  { %v1648_v19 = vrot.slane %v1632_v42, 2  ;;  %v1585_v33 = vsel %vm1457_vm6, %v2591_v9, %v1577_v55  ;;  %v1634_v38 = vmul.f32 %v1586_v28, %v1586_v28  ;;  %v1579_v3 = vadd.f32 %v1539_v22, %v1451_v10  ;;  %v2675_v43 = vpop.eup %2049 }
 0x328   :  { %v1633_v61 = vmul.f32 %v1585_v33, %v1585_v33  ;;  %v1567_v18 = vadd.f32 1.0, %v2675_v43  ;;  %v1552_v52 = vmul.f32 -0.5, %v2668_v48  ;;  %v1452_v57 = vmax.f32 %v2598_v1, 0.0 }
 0x329   :  { %v1664_v49 = vadd.f32 %v1648_v19, %v1624_v46  ;;  %v1650_v34 = vrot.slane %v1634_v38, 2  ;;  %v1587_v23 = vsel %vm1459_vm11, %v2594_v16, %v1579_v3  ;;  %v1543_v46 = vmul.f32 -0.5, %v2643_v30 }
 0x32a   :  { %v1649_v0 = vrot.slane %v1633_v61, 2  ;;  %v1635_v11 = vmul.f32 %v1587_v23, %v1587_v23  ;;  %vm1547_vm12 = vcmp.lt.f32.partialorder %v1546_v27, 0.0004427343  ;;  %v1561_v14 = vmul.f32 -0.5, %v2670_v2 }
 0x32b   :  { %v1672_v21 = vmax.f32 %v1664_v49, 1e-24  ;;  %v1666_v4 = vadd.f32 %v1650_v34, %v1626_v62  ;;  %v1544_v47 = vadd.f32 1.0, %v1543_v46  ;;  %v1597_v17 = vmul.f32 %v2606_v36, %v2606_v36 }
 0x32c   :  { %v1665_v12 = vadd.f32 %v1649_v0, %v1625_v54  ;;  %v1651_v60 = vrot.slane %v1635_v11, 2  ;;  %v1570_v35 = vmul.f32 -0.5, %v2675_v43  ;;  %v1628_v42 = vadd.f32 %v1612_v29, %v1596_v63 }
 0x32d   :  { %2053 = vrsqrt.f32 %v1672_v21  ;;  %v1674_v25 = vmax.f32 %v1666_v4, 1e-24  ;;  %v1545_v7 = vmul.f32 %v2643_v30, %v1544_v47  ;;  %v2692_v30 = vsub.s32 %v1740_v44, %v2156_v5 }
 0x32e   :  { %v1673_v15 = vmax.f32 %v1665_v12, 1e-24  ;;  %2055 = vlog2.f32 %v1549_v39  ;;  %v1667_v26 = vadd.f32 %v1651_v60, %v1627_v13  ;;  %v1453_v55 = vmax.f32 %v2606_v36, 0.0 }
 0x32f   :  { %2057 = vrsqrt.f32 %v1674_v25  ;;  %v1553_v32 = vadd.f32 1.0, %v1552_v52  ;;  %v1555_v28 = vand.u32 2147483647, %v2668_v48  ;;  %v1598_v10 = vmul.f32 %v2609_v58, %v2609_v58 }
 0x330   :  { %2059 = vrsqrt.f32 %v1673_v15  ;;  %v1675_v8 = vmax.f32 %v1667_v26, 1e-24  ;;  %v1454_v33 = vmax.f32 %v2609_v58, 0.0  ;;  %v1562_v38 = vadd.f32 1.0, %v1561_v14 }
 0x331   :  { %2061 = vlog2.f32 %v1558_v45  ;;  %v1564_v22 = vand.u32 2147483647, %v2670_v2  ;;  %v1613_v3 = vrot.slane %v1597_v17, 1  ;;  %v1571_v49 = vadd.f32 1.0, %v1570_v35 }
 0x332   :  { %2063 = vlog2.f32 %v1567_v18  ;;  %v2052_v6 = vpop.eup %2051  ;;  %v1554_v0 = vmul.f32 %v2668_v48, %v1553_v32  ;;  %v1573_v23 = vand.u32 2147483647, %v2675_v43  ;;  %vm1556_vm1 = vcmp.lt.f32.partialorder %v1555_v28, 0.0004427343 }
 0x333   :  { %2065 = vrsqrt.f32 %v1675_v8  ;;  %v1542_v41 = vmul.f32 0.6931472, %v2052_v6  ;;  %v1614_v4 = vrot.slane %v1598_v10, 1  ;;  %v1599_v11 = vmul.f32 %v2613_v59, %v2613_v59 }
 0x334   :  { %v1563_v39 = vmul.f32 %v2670_v2, %v1562_v38  ;;  %vm2716_vm2 = vcmp.lt.f32.partialorder %v1564_v22, 0.0004427343  ;;  %v1572_v26 = vmul.f32 %v2675_v43, %v1571_v49  ;;  %vm1574_vm3 = vcmp.lt.f32.partialorder %v1573_v23, 0.0004427343 }
 0x335   :  { %v1548_v51 = vsel %vm1547_vm12, %v1545_v7, %v1542_v41  ;;  %v1629_v6 = vadd.f32 %v1613_v3, %v1597_v17  ;;  %v1615_v35 = vrot.slane %v1599_v11, 1  ;;  %v1630_v32 = vadd.f32 %v1614_v4, %v1598_v10 }
 0x336   :  { %v1580_v37 = vadd.f32 %v1548_v51, %v1452_v57 }
 0x338   :  { %v1588_v50 = vsel %vm1460_vm13, %v2598_v1, %v1580_v37 }
 0x339   :  { %v1636_v5 = vmul.f32 %v1588_v50, %v1588_v50 }
 0x33a   :  { %v2054_v19 = vpop.eup %2053 }
 0x33b   :  { %v2056_v61 = vpop.eup %2055  ;;  %v1652_v34 = vrot.slane %v1636_v5, 2  ;;  %v1691_v12 = vrot.slane %v2054_v19, %v2685_v20  ;;  %v1631_v5 = vadd.f32 %v1615_v35, %v1599_v11 }
 0x33c   :  { %v2058_v62 = vpop.eup %2057  ;;  %v1551_v54 = vmul.f32 0.6931472, %v2056_v61 }
 0x33d   :  { %v2060_v21 = vpop.eup %2059  ;;  %v1699_v40 = vrot.slane %v2058_v62, %v2685_v20  ;;  %v1668_v47 = vadd.f32 %v1652_v34, %v1628_v42  ;;  %v1720_v43 = vmul.f32 %v1691_v12, %v2586_v56 }
 0x33e   :  { %v2062_v13 = vpop.eup %2061  ;;  %v1557_v46 = vsel %vm1556_vm1, %v1554_v0, %v1551_v54  ;;  %v1695_v48 = vrot.slane %v2060_v21, %v2685_v20 }
 0x33f   :  { %v2064_v60 = vpop.eup %2063  ;;  %v1581_v45 = vadd.f32 %v1557_v46, %v1453_v55  ;;  %v1560_v15 = vmul.f32 0.6931472, %v2062_v13  ;;  %v1722_v52 = vmul.f32 %v1699_v40, %v2588_v24  ;;  %v1676_v51 = vmax.f32 %v1668_v47, 1e-24 }
 0x340   :  { %v2066_v53 = vpop.eup %2065  ;;  %v1569_v63 = vmul.f32 0.6931472, %v2064_v60  ;;  %v1721_v18 = vmul.f32 %v1695_v48, %v2591_v9 }
 0x341   :  { %v1589_v2 = vsel %vm1461_vm14, %v2606_v36, %v1581_v45  ;;  %v1566_v8 = vsel %vm2716_vm2, %v1563_v39, %v1560_v15  ;;  %v1703_v27 = vrot.slane %v2066_v53, %v2685_v20  ;;  %2067 = vrsqrt.f32 %v1676_v51 }
 0x342   :  { %v1637_v44 = vmul.f32 %v1589_v2, %v1589_v2  ;;  %v1582_v41 = vadd.f32 %v1566_v8, %v1454_v33  ;;  %v1575_v7 = vsel %vm1574_vm3, %v1572_v26, %v1569_v63  ;;  %v1736_v57 = vcombine.low %v1720_v43, %v1721_v18 }
 0x343   :  { %v1583_v29 = vadd.f32 %v1575_v7, %v1455_v31  ;;  %v1723_v9 = vmul.f32 %v1703_v27, %v2594_v16 }
 0x344   :  { %v1653_v14 = vrot.slane %v1637_v44, 2  ;;  %v1590_v37 = vsel %vm1462_vm15, %v2609_v58, %v1582_v41  ;;  %v1744_v50 = vrot.slane %v1736_v57, %v2692_v30 }
 0x345   :  { %v1638_v42 = vmul.f32 %v1590_v37, %v1590_v37  ;;  %v1591_v56 = vsel %vm1463_vm0, %v2613_v59, %v1583_v29  ;;  %v1737_v17 = vcombine.low %v1722_v52, %v1723_v9 }
 0x346   :  { %v1669_v55 = vadd.f32 %v1653_v14, %v1629_v6  ;;  %v1639_v24 = vmul.f32 %v1591_v56, %v1591_v56 }
 0x347   :  { %v1654_v16 = vrot.slane %v1638_v42, 2  ;;  %v1751_v28 = vrot.slane %v1737_v17, %v2692_v30 }
 0x348   :  { %v1677_v19 = vmax.f32 %v1669_v55, 1e-24  ;;  %v1655_v33 = vrot.slane %v1639_v24, 2 }
 0x349   :  { %v1670_v38 = vadd.f32 %v1654_v16, %v1630_v32  ;;  %v1752_v22 = vcombine.low %v1744_v50, %v1751_v28 }
 0x34a   :  { %2069 = vrsqrt.f32 %v1677_v19  ;;  %v1671_v61 = vadd.f32 %v1655_v33, %v1631_v5 }
 0x34b   :  { %v1678_v3 = vmax.f32 %v1670_v38, 1e-24  ;;  %1772 = vst [vmem:[#allocation2] sm:$0xff] %v1752_v22 }
 0x34c   :  { %v1679_v31 = vmax.f32 %v1671_v61, 1e-24 }
 0x34d   :  { %2071 = vrsqrt.f32 %v1678_v3 }
 0x34e   :  { %2073 = vrsqrt.f32 %v1679_v31  ;;  %v2068_v49 = vpop.eup %2067 }
 0x34f   :  { %v1707_v62 = vrot.slane %v2068_v49, %v2685_v20 }
 0x351   :  { %v1724_v11 = vmul.f32 %v1707_v62, %v2598_v1 }
 0x357   :  { %v2070_v10 = vpop.eup %2069 }
 0x358   :  { %v1711_v34 = vrot.slane %v2070_v10, %v2685_v20 }
 0x35a   :  { %v2072_v54 = vpop.eup %2071  ;;  %v1725_v0 = vmul.f32 %v1711_v34, %v2606_v36 }
 0x35b   :  { %v2074_v23 = vpop.eup %2073  ;;  %v1715_v21 = vrot.slane %v2072_v54, %v2685_v20 }
 0x35c   :  { %v1719_v4 = vrot.slane %v2074_v23, %v2685_v20  ;;  %v1753_v46 = vcombine.low %v1724_v11, %v1725_v0 }
 0x35d   :  { %v1726_v12 = vmul.f32 %v1715_v21, %v2609_v58 }
 0x35e   :  { %v1727_v13 = vmul.f32 %v1719_v4, %v2613_v59  ;;  %v1761_v25 = vrot.slane %v1753_v46, %v2692_v30 }
 0x360   :  { %v1754_v39 = vcombine.low %v1726_v12, %v1727_v13 }
 0x362   :  { %v1768_v48 = vrot.slane %v1754_v39, %v2692_v30 }
 0x364   :  { %v1769_v36 = vcombine.low %v1761_v25, %v1768_v48 }
 0x366   :  { %1773 = vst [vmem:[#allocation2 + $0x8] sm:$0xff] %v1769_v36 }
 0x367   :  { %2086 = shalt.err (!%p2083_p4)
}
 0x368   :  { %1783 = dma.vmem_to_hbm [thread:$0]  %s1781_s13, 256, %s2766_s9, [#allocation3]  }
 0x369   :  { %2095 = dma.done.wait [#allocation3], 256  }
 0x36a   :  { %2096 = vsyncadd [#allocation3], 4294967040 }
 0x36b   :  { %1787 = vsyncpa [#allocation3], 1 }

</bundles_post_ra>
